<compile_context>
chip_gen: v5e
topology: v5e:2x2
jax: 0.10.0
libtpu: 0.0.40
codegen_flags: <defaults>
</compile_context>

<pallas_src>
import functools

import jax
import jax.numpy as jnp
from jax import lax
from jax.experimental import pallas as pl
from jax.experimental.pallas import tpu as pltpu


def _round_up(x, m):
    return ((x + m - 1) // m) * m


def _vmem_limit_bytes():
    # v5e/v6e have 128 MiB VMEM per TensorCore, v7x only 64 MiB.  Use ~3/4 of
    # whatever this chip reports, capped at 112 MiB.
    cap = 128 * 1024 * 1024
    try:
        info = pltpu.get_tpu_info()
        cap = int(getattr(info, "vmem_capacity_bytes", cap))
    except Exception:
        pass
    return int(min(112 * 1024 * 1024, (cap * 3) // 4))


# ----------------------------------------------------------------------------
# Pallas kernel: fused 3x3 conv (9 shifted MXU matmuls) + folded-BN bias + SiLU
# ----------------------------------------------------------------------------
def _conv3x3_bn_silu_kernel(x_hbm, w_ref, b_ref, o_ref, xbuf, xf32, sem, *,
                            row, l_pad, tile_m, tin):
    # x_hbm: (N*l_pad, cin_pad)      bf16, HBM (pl.ANY) -- flattened padded slab
    # w_ref: (9, cin_pad, cout_pad)  bf16, VMEM-resident (constant index_map)
    # b_ref: (1, cout_pad)           f32,  VMEM-resident
    # o_ref: (tile_m, cout_pad)      bf16  -- output row-block (lane-dense)
    # xbuf:  (tin, cin_pad)          bf16  scratch -- DMA'd halo window
    # xf32:  (tin, cin_pad)          f32   scratch -- upcast window
    n = pl.program_id(0)
    m = pl.program_id(1)

    # ---- fetch this block's input window (tile_m rows + 3x3 halo) ----------
    row0 = pl.multiple_of(n * l_pad + m * tile_m, 8)
    cp = pltpu.make_async_copy(x_hbm.at[pl.ds(row0, tin), :], xbuf, sem.at[0])
    cp.start()
    cp.wait()
    # TODO(synk): double-buffer this DMA across m-steps to hide its latency.

    # One cheap VPU pass; keeps the statically shifted tap slices on the
    # well-supported 32-bit sublane path (window is small: tin x cin_pad).
    xf32[...] = xbuf[...].astype(jnp.float32)

    # ---- 3x3 conv = 9 statically shifted MXU matmuls, value-accumulated ----
    acc = None
    for dy in range(3):
        for dx in range(3):
            off = dy * row + dx                              # static offset
            lhs = xf32[off:off + tile_m, :].astype(jnp.bfloat16)
            term = jnp.dot(lhs, w_ref[3 * dy + dx],
                           preferred_element_type=jnp.float32)
            acc = term if acc is None else acc + term

    # ---- folded-BN bias + SiLU in f32, single bf16 store --------------------
    y = acc + b_ref[...]
    silu = y * pl.reciprocal(1.0 + jnp.exp(-y), approx=True)
    o_ref[...] = silu.astype(o_ref.dtype)


def conv3x3_bn_silu_pallas(x_nhwc, w_hwio, b, *, tile_m=512):
    """Fused Conv2d(3x3, stride 1, SAME, no bias) + folded BN + SiLU.

    x_nhwc: [N, H, W, Cin] f32;  w_hwio: [3, 3, Cin, Cout];  b: [Cout]
    returns [N, H, W, Cout] bf16.
    """
    assert tile_m % 16 == 0
    N, H, W, Cin = x_nhwc.shape
    Cout = w_hwio.shape[-1]

    cin_pad = _round_up(max(Cin, 1), 8)
    cout_pad = _round_up(max(Cout, 1), 128)      # lane-dense output / MXU N dim
    row = W + 2                                  # padded row stride
    m_out = H * row                              # flattened output rows / image

    tile_m = min(tile_m, _round_up(m_out, 16))
    n_m = pl.cdiv(m_out, tile_m)
    m_out_pad = n_m * tile_m
    tin = _round_up(tile_m + 2 * row + 2, 8)     # window rows incl. 3x3 halo
    l_pad = _round_up(max((H + 2) * row, (n_m - 1) * tile_m + tin), 8)

    # Zero-padded NHWC slab, flattened per image, bf16 in HBM (one fused
    # pad+cast+reshape; the kernel reads it via manual windowed DMA).
    xp = jnp.pad(x_nhwc, ((0, 0), (1, 1), (1, 1), (0, cin_pad - Cin)))
    xp = xp.astype(jnp.bfloat16).reshape(N, (H + 2) * row, cin_pad)
    xp = jnp.pad(xp, ((0, 0), (0, l_pad - (H + 2) * row), (0, 0)))
    xp = xp.reshape(N * l_pad, cin_pad)

    # Folded conv*BN weight, tap-major: [9, cin_pad, cout_pad] bf16 (MXU rate).
    wq = jnp.pad(w_hwio, ((0, 0), (0, 0),
                          (0, cin_pad - Cin), (0, cout_pad - Cout)))
    wq = wq.reshape(9, cin_pad, cout_pad).astype(jnp.bfloat16)

    # Folded BN bias: [1, cout_pad] f32 (bias + SiLU epilogue stays f32).
    bq = jnp.pad(b, (0, cout_pad - Cout)).reshape(1, cout_pad).astype(jnp.float32)

    kernel = functools.partial(_conv3x3_bn_silu_kernel,
                               row=row, l_pad=l_pad, tile_m=tile_m, tin=tin)

    cost = pl.CostEstimate(
        flops=2 * N * m_out_pad * 9 * cin_pad * cout_pad,
        transcendentals=N * m_out_pad * cout_pad,
        bytes_accessed=(int(xp.size) * 2 + int(wq.size) * 2 + int(bq.size) * 4
                        + N * m_out_pad * cout_pad * 2),
    )

    out = pl.pallas_call(
        kernel,
        out_shape=jax.ShapeDtypeStruct((N, m_out_pad, cout_pad), jnp.bfloat16),
        grid_spec=pltpu.PrefetchScalarGridSpec(
            num_scalar_prefetch=0,
            grid=(N, n_m),
            in_specs=[
                pl.BlockSpec(memory_space=pl.ANY),                  # slab, HBM
                pl.BlockSpec((9, cin_pad, cout_pad), lambda n, m: (0, 0, 0)),
                pl.BlockSpec((1, cout_pad), lambda n, m: (0, 0)),
            ],
            out_specs=pl.BlockSpec((None, tile_m, cout_pad),
                                   lambda n, m: (n, m, 0)),
            scratch_shapes=[
                pltpu.VMEM((tin, cin_pad), jnp.bfloat16),
                pltpu.VMEM((tin, cin_pad), jnp.float32),
                pltpu.SemaphoreType.DMA((1,)),
            ],
        ),
        compiler_params=pltpu.CompilerParams(
            dimension_semantics=("parallel", "parallel"),
            vmem_limit_bytes=_vmem_limit_bytes(),
        ),
        cost_estimate=cost,
    )(xp, wq, bq)

    # Drop padded rows / junk columns / padded channels; stay bf16 downstream.
    out = out[:, :m_out, :Cout].reshape(N, H, row, Cout)[:, :, :W, :]
    return out


# ----------------------------------------------------------------------------
# Inner synthetic "model" (YOLOv8 Conv block) + WrapperModel equivalent
# ----------------------------------------------------------------------------
def make_inner_model_params(key, cin, cout):
    """Deterministic Conv(3x3) + BN params, BN folded into (w_hwio, b)."""
    k_w, k_g, k_b = jax.random.split(key, 3)
    w_oihw = 0.1 * jax.random.normal(k_w, (cout, cin, 3, 3), dtype=jnp.float32)
    gamma = 1.0 + 0.1 * jax.random.normal(k_g, (cout,), dtype=jnp.float32)
    beta = 0.1 * jax.random.normal(k_b, (cout,), dtype=jnp.float32)
    running_mean = jnp.zeros((cout,), jnp.float32)
    running_var = jnp.ones((cout,), jnp.float32)
    eps = 1e-5

    scale = gamma / jnp.sqrt(running_var + eps)            # [Cout]
    w_folded_oihw = w_oihw * scale[:, None, None, None]    # fold BN scale
    b_folded = beta - scale * running_mean                 # fold BN shift
    w_hwio = jnp.transpose(w_folded_oihw, (2, 3, 1, 0))    # [kh, kw, Cin, Cout]
    return w_hwio, b_folded, (w_oihw, gamma, beta, running_mean, running_var, eps)


def inner_model_apply(params, x_nchw, *, tile_m=512):
    """YOLOv8 Conv block: Conv2d(k3,s1,p1,no bias) + BN + SiLU. NCHW in/out."""
    w_hwio, b_folded, _ = params
    x_nhwc = jnp.transpose(x_nchw, (0, 2, 3, 1))
    out_nhwc = conv3x3_bn_silu_pallas(x_nhwc, w_hwio, b_folded, tile_m=tile_m)
    return jnp.transpose(out_nhwc, (0, 3, 1, 2))           # back to NCHW, bf16


class WrapperModel:
    """JAX equivalent of the PyTorch WrapperModel: pure pass-through."""

    def __init__(self, model_fn):
        self.model = model_fn

    def __call__(self, *args, **kwargs):
        return self.model(*args, **kwargs)


# ----------------------------------------------------------------------------
# Reference (plain JAX, f32) for correctness check
# ----------------------------------------------------------------------------
def reference_forward(params, x_nchw):
    w_oihw, gamma, beta, mean, var, eps = params[2]
    y = lax.conv_general_dilated(
        x_nchw, w_oihw, window_strides=(1, 1), padding="SAME",
        dimension_numbers=("NCHW", "OIHW", "NCHW"))
    scale = gamma / jnp.sqrt(var + eps)
    y = y * scale[None, :, None, None] + (beta - scale * mean)[None, :, None, None]
    return y * jax.nn.sigmoid(y)


# ----------------------------------------------------------------------------
if __name__ == "__main__":
    key = jax.random.PRNGKey(0)
    k_x, k_p = jax.random.split(key)

    N, Cin, H, W = 2, 4, 16, 16
    Cout = 8
    x = jax.random.normal(k_x, (N, Cin, H, W), dtype=jnp.float32)

    params = make_inner_model_params(k_p, Cin, Cout)
    # tile_m=160 at this toy size so the windowed M (row-block) grid axis is
    # actually exercised (2 m-blocks per image); keep the 512 default for real
    # YOLOv8 resolutions (>=512 on v5e/v6e, ~256-512 on v7x).
    model_fn = functools.partial(inner_model_apply, params, tile_m=160)
    wrapper = WrapperModel(model_fn)      # forward(*args) -> model(*args)

    out = jax.jit(lambda v: wrapper(v))(x)
    out = jax.block_until_ready(out)

    ref = jax.block_until_ready(reference_forward(params, x))
    assert out.shape == (N, Cout, H, W), out.shape
    # bf16 MXU operands + bf16 output vs f32 reference -> loosened tolerance.
    out_f32 = out.astype(jnp.float32)
    max_err = float(jnp.max(jnp.abs(out_f32 - ref)))
    assert jnp.allclose(out_f32, ref, atol=5e-2, rtol=5e-2), max_err

    print("KERNEL_OK")
</pallas_src>

<mosaic_0001>
module attributes {stable_mosaic.version = 11 : i64} {
  func.func @_conv3x3_bn_silu_kernel(%arg0: i32, %arg1: i32, %arg2: memref<720x8xbf16, #tpu.memory_space<any>>, %arg3: memref<9x8x128xbf16, #tpu.memory_space<vmem>>, %arg4: memref<1x128xf32, #tpu.memory_space<vmem>>, %arg5: memref<1x160x128xbf16, #tpu.memory_space<vmem>>, %arg6: memref<200x8xbf16, #tpu.memory_space<vmem>>, %arg7: memref<200x8xf32, #tpu.memory_space<vmem>>, %arg8: memref<1x!tpu.dma_semaphore, #tpu.memory_space<semaphore_mem>>) attributes {dimension_semantics = [#tpu.dimension_semantics<parallel>, #tpu.dimension_semantics<parallel>], iteration_bounds = array<i64: 2, 2>, scalar_prefetch = 0 : i64, scratch_operands = 3 : i64, tpu.core_type = #tpu.core_type<tc>, window_params = [{}, {pipeline_mode = #tpu.pipeline_mode<synchronous>, transform_indices = @transform_1, window_bounds = array<i64: 9, 8, 128>}, {pipeline_mode = #tpu.pipeline_mode<synchronous>, transform_indices = @transform_2, window_bounds = array<i64: 1, 128>}, {transform_indices = @transform_3, window_bounds = array<i64: 1, 160, 128>}]} {
    %c360_i32 = arith.constant 360 : i32
    %0 = arith.muli %arg0, %c360_i32 : i32
    %c160_i32 = arith.constant 160 : i32
    %1 = arith.muli %arg1, %c160_i32 : i32
    %2 = arith.addi %0, %1 : i32
    %3 = tpu.assume_multiple %2, 8 : i32
    %c0_i32 = arith.constant 0 : i32
    %c0_i32_0 = arith.constant 0 : i32
    %4 = tpu.memref_slice %arg2[%3, %c0_i32_0] : memref<720x8xbf16, #tpu.memory_space<any>> -> memref<200x8xbf16, #tpu.memory_space<any>>
    %5 = tpu.memref_slice %arg8[%c0_i32] : memref<1x!tpu.dma_semaphore, #tpu.memory_space<semaphore_mem>> -> memref<1x!tpu.dma_semaphore, #tpu.memory_space<semaphore_mem>>
    %6 = tpu.memref_squeeze %5 : memref<1x!tpu.dma_semaphore, #tpu.memory_space<semaphore_mem>> -> memref<!tpu.dma_semaphore, #tpu.memory_space<semaphore_mem>>
    tpu.enqueue_dma source(%4 : memref<200x8xbf16, #tpu.memory_space<any>>) target(%arg6 : memref<200x8xbf16, #tpu.memory_space<vmem>>) target_semaphore(%6 : memref<!tpu.dma_semaphore, #tpu.memory_space<semaphore_mem>>)
    %c0_i32_1 = arith.constant 0 : i32
    %c0_i32_2 = arith.constant 0 : i32
    %7 = tpu.memref_slice %arg2[%3, %c0_i32_2] : memref<720x8xbf16, #tpu.memory_space<any>> -> memref<200x8xbf16, #tpu.memory_space<any>>
    %8 = tpu.memref_slice %arg8[%c0_i32_1] : memref<1x!tpu.dma_semaphore, #tpu.memory_space<semaphore_mem>> -> memref<1x!tpu.dma_semaphore, #tpu.memory_space<semaphore_mem>>
    %9 = tpu.memref_squeeze %8 : memref<1x!tpu.dma_semaphore, #tpu.memory_space<semaphore_mem>> -> memref<!tpu.dma_semaphore, #tpu.memory_space<semaphore_mem>>
    tpu.wait_dma2 semaphore(%9 : memref<!tpu.dma_semaphore, #tpu.memory_space<semaphore_mem>>) src(%7 : memref<200x8xbf16, #tpu.memory_space<any>>) dst(%arg6 : memref<200x8xbf16, #tpu.memory_space<vmem>>)
    %c0 = arith.constant 0 : index
    %c0_3 = arith.constant 0 : index
    %10 = vector.load %arg6[%c0, %c0_3] : memref<200x8xbf16, #tpu.memory_space<vmem>>, vector<200x8xbf16>
    %11 = arith.extf %10 : vector<200x8xbf16> to vector<200x8xf32>
    %c0_4 = arith.constant 0 : index
    %c0_5 = arith.constant 0 : index
    %12 = vector.load %arg7[%c0_4, %c0_5] : memref<200x8xf32, #tpu.memory_space<vmem>>, vector<200x8xf32>
    tpu.vector_store %arg7[%c0_4, %c0_5], %11 {strides = array<i32>} : memref<200x8xf32, #tpu.memory_space<vmem>>, vector<200x8xf32>,
    %c0_6 = arith.constant 0 : index
    %c0_7 = arith.constant 0 : index
    %13 = vector.load %arg7[%c0_6, %c0_7] : memref<200x8xf32, #tpu.memory_space<vmem>>, vector<160x8xf32>
    %14 = arith.truncf %13 : vector<160x8xf32> to vector<160x8xbf16>
    %c0_8 = arith.constant 0 : index
    %c0_9 = arith.constant 0 : index
    %c0_10 = arith.constant 0 : index
    %15 = vector.load %arg3[%c0_8, %c0_9, %c0_10] : memref<9x8x128xbf16, #tpu.memory_space<vmem>>, vector<1x8x128xbf16>
    %16 = vector.shape_cast %15 : vector<1x8x128xbf16> to vector<8x128xbf16>
    %cst = arith.constant dense<0.000000e+00> : vector<160x128xf32>
    %17 = tpu.matmul %14, %16, %cst {dimension_numbers = #tpu.dot_dimension_numbers<[1], [0], [0], [1], [0, 0, 1, 1], [], []>} : vector<160x8xbf16>, vector<8x128xbf16>, vector<160x128xf32> -> vector<160x128xf32>
    %c1 = arith.constant 1 : index
    %c0_11 = arith.constant 0 : index
    %18 = vector.load %arg7[%c1, %c0_11] : memref<200x8xf32, #tpu.memory_space<vmem>>, vector<160x8xf32>
    %19 = arith.truncf %18 : vector<160x8xf32> to vector<160x8xbf16>
    %c1_12 = arith.constant 1 : index
    %c0_13 = arith.constant 0 : index
    %c0_14 = arith.constant 0 : index
    %20 = vector.load %arg3[%c1_12, %c0_13, %c0_14] : memref<9x8x128xbf16, #tpu.memory_space<vmem>>, vector<1x8x128xbf16>
    %21 = vector.shape_cast %20 : vector<1x8x128xbf16> to vector<8x128xbf16>
    %cst_15 = arith.constant dense<0.000000e+00> : vector<160x128xf32>
    %22 = tpu.matmul %19, %21, %cst_15 {dimension_numbers = #tpu.dot_dimension_numbers<[1], [0], [0], [1], [0, 0, 1, 1], [], []>} : vector<160x8xbf16>, vector<8x128xbf16>, vector<160x128xf32> -> vector<160x128xf32>
    %23 = arith.addf %17, %22 : vector<160x128xf32>
    %c2 = arith.constant 2 : index
    %c0_16 = arith.constant 0 : index
    %24 = vector.load %arg7[%c2, %c0_16] : memref<200x8xf32, #tpu.memory_space<vmem>>, vector<160x8xf32>
    %25 = arith.truncf %24 : vector<160x8xf32> to vector<160x8xbf16>
    %c2_17 = arith.constant 2 : index
    %c0_18 = arith.constant 0 : index
    %c0_19 = arith.constant 0 : index
    %26 = vector.load %arg3[%c2_17, %c0_18, %c0_19] : memref<9x8x128xbf16, #tpu.memory_space<vmem>>, vector<1x8x128xbf16>
    %27 = vector.shape_cast %26 : vector<1x8x128xbf16> to vector<8x128xbf16>
    %cst_20 = arith.constant dense<0.000000e+00> : vector<160x128xf32>
    %28 = tpu.matmul %25, %27, %cst_20 {dimension_numbers = #tpu.dot_dimension_numbers<[1], [0], [0], [1], [0, 0, 1, 1], [], []>} : vector<160x8xbf16>, vector<8x128xbf16>, vector<160x128xf32> -> vector<160x128xf32>
    %29 = arith.addf %23, %28 : vector<160x128xf32>
    %c18 = arith.constant 18 : index
    %c0_21 = arith.constant 0 : index
    %30 = vector.load %arg7[%c18, %c0_21] : memref<200x8xf32, #tpu.memory_space<vmem>>, vector<160x8xf32>
    %31 = arith.truncf %30 : vector<160x8xf32> to vector<160x8xbf16>
    %c3 = arith.constant 3 : index
    %c0_22 = arith.constant 0 : index
    %c0_23 = arith.constant 0 : index
    %32 = vector.load %arg3[%c3, %c0_22, %c0_23] : memref<9x8x128xbf16, #tpu.memory_space<vmem>>, vector<1x8x128xbf16>
    %33 = vector.shape_cast %32 : vector<1x8x128xbf16> to vector<8x128xbf16>
    %cst_24 = arith.constant dense<0.000000e+00> : vector<160x128xf32>
    %34 = tpu.matmul %31, %33, %cst_24 {dimension_numbers = #tpu.dot_dimension_numbers<[1], [0], [0], [1], [0, 0, 1, 1], [], []>} : vector<160x8xbf16>, vector<8x128xbf16>, vector<160x128xf32> -> vector<160x128xf32>
    %35 = arith.addf %29, %34 : vector<160x128xf32>
    %c19 = arith.constant 19 : index
    %c0_25 = arith.constant 0 : index
    %36 = vector.load %arg7[%c19, %c0_25] : memref<200x8xf32, #tpu.memory_space<vmem>>, vector<160x8xf32>
    %37 = arith.truncf %36 : vector<160x8xf32> to vector<160x8xbf16>
    %c4 = arith.constant 4 : index
    %c0_26 = arith.constant 0 : index
    %c0_27 = arith.constant 0 : index
    %38 = vector.load %arg3[%c4, %c0_26, %c0_27] : memref<9x8x128xbf16, #tpu.memory_space<vmem>>, vector<1x8x128xbf16>
    %39 = vector.shape_cast %38 : vector<1x8x128xbf16> to vector<8x128xbf16>
    %cst_28 = arith.constant dense<0.000000e+00> : vector<160x128xf32>
    %40 = tpu.matmul %37, %39, %cst_28 {dimension_numbers = #tpu.dot_dimension_numbers<[1], [0], [0], [1], [0, 0, 1, 1], [], []>} : vector<160x8xbf16>, vector<8x128xbf16>, vector<160x128xf32> -> vector<160x128xf32>
    %41 = arith.addf %35, %40 : vector<160x128xf32>
    %c20 = arith.constant 20 : index
    %c0_29 = arith.constant 0 : index
    %42 = vector.load %arg7[%c20, %c0_29] : memref<200x8xf32, #tpu.memory_space<vmem>>, vector<160x8xf32>
    %43 = arith.truncf %42 : vector<160x8xf32> to vector<160x8xbf16>
    %c5 = arith.constant 5 : index
    %c0_30 = arith.constant 0 : index
    %c0_31 = arith.constant 0 : index
    %44 = vector.load %arg3[%c5, %c0_30, %c0_31] : memref<9x8x128xbf16, #tpu.memory_space<vmem>>, vector<1x8x128xbf16>
    %45 = vector.shape_cast %44 : vector<1x8x128xbf16> to vector<8x128xbf16>
    %cst_32 = arith.constant dense<0.000000e+00> : vector<160x128xf32>
    %46 = tpu.matmul %43, %45, %cst_32 {dimension_numbers = #tpu.dot_dimension_numbers<[1], [0], [0], [1], [0, 0, 1, 1], [], []>} : vector<160x8xbf16>, vector<8x128xbf16>, vector<160x128xf32> -> vector<160x128xf32>
    %47 = arith.addf %41, %46 : vector<160x128xf32>
    %c36 = arith.constant 36 : index
    %c0_33 = arith.constant 0 : index
    %48 = vector.load %arg7[%c36, %c0_33] : memref<200x8xf32, #tpu.memory_space<vmem>>, vector<160x8xf32>
    %49 = arith.truncf %48 : vector<160x8xf32> to vector<160x8xbf16>
    %c6 = arith.constant 6 : index
    %c0_34 = arith.constant 0 : index
    %c0_35 = arith.constant 0 : index
    %50 = vector.load %arg3[%c6, %c0_34, %c0_35] : memref<9x8x128xbf16, #tpu.memory_space<vmem>>, vector<1x8x128xbf16>
    %51 = vector.shape_cast %50 : vector<1x8x128xbf16> to vector<8x128xbf16>
    %cst_36 = arith.constant dense<0.000000e+00> : vector<160x128xf32>
    %52 = tpu.matmul %49, %51, %cst_36 {dimension_numbers = #tpu.dot_dimension_numbers<[1], [0], [0], [1], [0, 0, 1, 1], [], []>} : vector<160x8xbf16>, vector<8x128xbf16>, vector<160x128xf32> -> vector<160x128xf32>
    %53 = arith.addf %47, %52 : vector<160x128xf32>
    %c37 = arith.constant 37 : index
    %c0_37 = arith.constant 0 : index
    %54 = vector.load %arg7[%c37, %c0_37] : memref<200x8xf32, #tpu.memory_space<vmem>>, vector<160x8xf32>
    %55 = arith.truncf %54 : vector<160x8xf32> to vector<160x8xbf16>
    %c7 = arith.constant 7 : index
    %c0_38 = arith.constant 0 : index
    %c0_39 = arith.constant 0 : index
    %56 = vector.load %arg3[%c7, %c0_38, %c0_39] : memref<9x8x128xbf16, #tpu.memory_space<vmem>>, vector<1x8x128xbf16>
    %57 = vector.shape_cast %56 : vector<1x8x128xbf16> to vector<8x128xbf16>
    %cst_40 = arith.constant dense<0.000000e+00> : vector<160x128xf32>
    %58 = tpu.matmul %55, %57, %cst_40 {dimension_numbers = #tpu.dot_dimension_numbers<[1], [0], [0], [1], [0, 0, 1, 1], [], []>} : vector<160x8xbf16>, vector<8x128xbf16>, vector<160x128xf32> -> vector<160x128xf32>
    %59 = arith.addf %53, %58 : vector<160x128xf32>
    %c38 = arith.constant 38 : index
    %c0_41 = arith.constant 0 : index
    %60 = vector.load %arg7[%c38, %c0_41] : memref<200x8xf32, #tpu.memory_space<vmem>>, vector<160x8xf32>
    %61 = arith.truncf %60 : vector<160x8xf32> to vector<160x8xbf16>
    %c8 = arith.constant 8 : index
    %c0_42 = arith.constant 0 : index
    %c0_43 = arith.constant 0 : index
    %62 = vector.load %arg3[%c8, %c0_42, %c0_43] : memref<9x8x128xbf16, #tpu.memory_space<vmem>>, vector<1x8x128xbf16>
    %63 = vector.shape_cast %62 : vector<1x8x128xbf16> to vector<8x128xbf16>
    %cst_44 = arith.constant dense<0.000000e+00> : vector<160x128xf32>
    %64 = tpu.matmul %61, %63, %cst_44 {dimension_numbers = #tpu.dot_dimension_numbers<[1], [0], [0], [1], [0, 0, 1, 1], [], []>} : vector<160x8xbf16>, vector<8x128xbf16>, vector<160x128xf32> -> vector<160x128xf32>
    %65 = arith.addf %59, %64 : vector<160x128xf32>
    %c0_45 = arith.constant 0 : index
    %c0_46 = arith.constant 0 : index
    %66 = vector.load %arg4[%c0_45, %c0_46] : memref<1x128xf32, #tpu.memory_space<vmem>>, vector<1x128xf32>
    %67 = vector.broadcast %66 : vector<1x128xf32> to vector<160x128xf32>
    %68 = arith.addf %65, %67 : vector<160x128xf32>
    %cst_47 = arith.constant 0.000000e+00 : f32
    %69 = vector.broadcast %cst_47 : f32 to vector<160x128xf32>
    %70 = arith.subf %69, %68 : vector<160x128xf32>
    %71 = math.exp %70 : vector<160x128xf32>
    %cst_48 = arith.constant 1.000000e+00 : f32
    %72 = vector.broadcast %cst_48 : f32 to vector<160x128xf32>
    %73 = arith.addf %72, %71 : vector<160x128xf32>
    %74 = tpu.reciprocal %73 {approx = true} : vector<160x128xf32> -> vector<160x128xf32>
    %75 = arith.mulf %68, %74 : vector<160x128xf32>
    %76 = arith.truncf %75 : vector<160x128xf32> to vector<160x128xbf16>
    %c0_49 = arith.constant 0 : index
    %c0_50 = arith.constant 0 : index
    %c0_51 = arith.constant 0 : index
    %77 = vector.load %arg5[%c0_49, %c0_50, %c0_51] : memref<1x160x128xbf16, #tpu.memory_space<vmem>>, vector<1x160x128xbf16>
    %78 = vector.shape_cast %77 : vector<1x160x128xbf16> to vector<160x128xbf16>
    %79 = vector.shape_cast %76 : vector<160x128xbf16> to vector<1x160x128xbf16>
    tpu.vector_store %arg5[%c0_49, %c0_50, %c0_51], %79 {strides = array<i32>} : memref<1x160x128xbf16, #tpu.memory_space<vmem>>, vector<1x160x128xbf16>,
    return
  }
  func.func @transform_1(%arg0: i32, %arg1: i32) -> (i32, i32, i32) {
    %c0_i32 = arith.constant 0 : i32
    %c0_i32_0 = arith.constant 0 : i32
    %c0_i32_1 = arith.constant 0 : i32
    %c0_i32_2 = arith.constant 0 : i32
    return %c0_i32, %c0_i32_0, %c0_i32_1 : i32, i32, i32
  }
  func.func @transform_2(%arg0: i32, %arg1: i32) -> (i32, i32) {
    %c0_i32 = arith.constant 0 : i32
    %c0_i32_0 = arith.constant 0 : i32
    %c0_i32_1 = arith.constant 0 : i32
    return %c0_i32, %c0_i32_0 : i32, i32
  }
  func.func @transform_3(%arg0: i32, %arg1: i32) -> (i32, i32, i32) {
    %c0_i32 = arith.constant 0 : i32
    %c0_i32_0 = arith.constant 0 : i32
    return %arg0, %arg1, %c0_i32 : i32, i32, i32
  }
}

</mosaic_0001>

<bundles_post_ra>
// kernel: _lambda_.1
= control target key start
LH: loop header
LB: loop body
LE: loop exit
PB: predicated region body
PF: predicated region fallthrough
CT: control target
= control target key end

     0   :  { %s2229_s12 = smov 0   ;;  %s2231_s13 = smov 0   ;;  %s2644_s0 = inlined_call_operand.vmem [shape: bf16[720,8], index: 0, kind: input, shape index: {}]   ;;  %s2645_s1 = inlined_call_operand.vmem [shape: bf16[9,8,128], index: 1, kind: input, shape index: {}]   ;;  %s2646_s2 = inlined_call_operand.vmem [shape: f32[1,128], index: 2, kind: input, shape index: {}]   ;;  %s2647_s3 = inlined_call_operand.vmem [shape: bf16[2,320,128], index: 3, kind: output, shape index: {}]  }
   0x1   :  { %s2233_s14 = smov 0   ;;  %s2235_s15 = smov 0  }
   0x2   :  { %s2237_s16 = smov 0  }
   0x3 LB: > { %s22_s17 = sadd.s32 1, %s2199_s14  ;;  %s25_s18 = sadd.s32 1, %s2203_s15  ;;  %s2207_s16 = sphi %s2237_s16, %s13_s16   ;;  %s2203_s15 = sphi %s2235_s15, %s2651_s15   ;;  %s2199_s14 = sphi %s2233_s14, %s2650_s14   ;;  %s2195_s13 = sphi %s2231_s13, %s2649_s13   ;;  %s2191_s12 = sphi %s2229_s12, %s2648_s12  }
   0x4   : > { %p23_p0 = scmp.ge.s32.totalorder %s22_s17, 2  ;;  %p1819_p1 = scmp.ge.s32.totalorder %s2207_s16, 1 }
   0x5   : > { %p117_p2 = scmp.lt.s32.totalorder %s2207_s16, 5 }
   0x6   : > { %s2653_s17 = smov (%p23_p0, %s22_s17), 0  ;;  %s2655_s18 = smov (!%p23_p0, %s25_s18), %s2203_s15 }
   0x7   : > { %p118_p3 = pnand %p1819_p1, %p117_p2  ;;  %p27_p4 = scmp.ge.s32.totalorder %s2655_s18, 2 }
   0x8   : > { %s138_s19 = smul.u32 (!%p118_p3), 20, %s2191_s12  ;;  %p139_p5 = scmp.lt.s32.totalorder (!%p118_p3), %s2195_s13, 1 }
   0x9   : > { %s2657_s18 = smov (%p27_p4, %s2655_s18), 0  ;;  %121 = sbr.rel (%p118_p3) target bundleno = 578 (0x242), region = 28 }
   0xa   : > { %s149_s20 = smul.u32 (!%p118_p3), 360, %s2195_s13  ;;  %p141_p6 = scmp.lt.s32.totalorder (!%p118_p3), %s138_s19, 39 }
   0xb   : > { %s150_s21 = smul.u32 (!%p118_p3), 160, %s2191_s12 }
   0xd   : > { %s151_s23 = sadd.s32 (!%p118_p3), %s150_s21, %s149_s20 }
   0xe   : > { %s2659_s13 = smov (!%p139_p5, %s2195_s13), 1  ;;  %s2661_s19 = smov (!%p141_p6, %s138_s19), 39 }
   0xf   : > { %s2045_s22 = smul.u32 40, %s2659_s13  ;;  %s152_s25 = sshra.s32 %s151_s23, 3 }
  0x10   : > { %s1821_s27 = sshll.u32 %s152_s25, 2 }
  0x11   : > { %s144_s24 = sadd.s32 %s2045_s22, %s2661_s19  ;;  %s155_s6 = scalar_lea.vmem %s2644_s0, %s1821_s27 }
  0x12   : > { %s1820_s26 = sshll.u32 %s144_s24, 2  ;;  %v168_v0 = vld [vmem:[%s155_s6] sm:$0xff]  ;;  %v170_v1 = vld [vmem:[%s155_s6 + $0x8] sm:$0xff]  ;;  %v172_v2 = vld [vmem:[%s155_s6 + $0x10] sm:$0xff] }
  0x13   : > { %s2262_s30 = scalar_lea.vmem %s2647_s3, %s1820_s26  ;;  %169 = vst [vmem:[#allocation2] sm:$0xff] %v168_v0  ;;  %v174_v3 = vld [vmem:[%s155_s6 + $0x18] sm:$0xff]  ;;  %v176_v4 = vld [vmem:[%s155_s6 + $0x20] sm:$0xff]  ;;  %v178_v5 = vld [vmem:[%s155_s6 + $0x28] sm:$0xff] }
  0x14   : > { %171 = vst [vmem:[#allocation2 + $0x8] sm:$0xff] %v170_v1  ;;  %v180_v6 = vld [vmem:[%s155_s6 + $0x30] sm:$0xff]  ;;  %v182_v7 = vld [vmem:[%s155_s6 + $0x38] sm:$0xff]  ;;  %v184_v8 = vld [vmem:[%s155_s6 + $0x40] sm:$0xff] }
  0x15   : > { %173 = vst [vmem:[#allocation2 + $0x10] sm:$0xff] %v172_v2  ;;  %v186_v9 = vld [vmem:[%s155_s6 + $0x48] sm:$0xff]  ;;  %v188_v10 = vld [vmem:[%s155_s6 + $0x50] sm:$0xff]  ;;  %v190_v11 = vld [vmem:[%s155_s6 + $0x58] sm:$0xff] }
  0x16   : > { %175 = vst [vmem:[#allocation2 + $0x18] sm:$0xff] %v174_v3  ;;  %v1822_v12 = vld [vmem:[%s155_s6 + $0x60] sm:$0xf] }
  0x17   : > { %177 = vst [vmem:[#allocation2 + $0x20] sm:$0xff] %v176_v4 }
  0x18   : > { %179 = vst [vmem:[#allocation2 + $0x28] sm:$0xff] %v178_v5 }
  0x19   : > { %181 = vst [vmem:[#allocation2 + $0x30] sm:$0xff] %v180_v6 }
  0x1a   : > { %183 = vst [vmem:[#allocation2 + $0x38] sm:$0xff] %v182_v7 }
  0x1b   : > { %185 = vst [vmem:[#allocation2 + $0x40] sm:$0xff] %v184_v8 }
  0x1c   : > { %187 = vst [vmem:[#allocation2 + $0x48] sm:$0xff] %v186_v9 }
  0x1d   : > { %189 = vst [vmem:[#allocation2 + $0x50] sm:$0xff] %v188_v10 }
  0x1e   : > { %191 = vst [vmem:[#allocation2 + $0x58] sm:$0xff] %v190_v11 }
  0x1f   : > { %203 = vst [vmem:[#allocation2 + $0x60] sm:$0xf] %v1822_v12 }
  0x20   : > { %207 = vsyncadd [#allocation4], 1600 }
  0x21   : > { %2187 = dma.done.wait [#allocation4], 1600 }
  0x22   : > { %2188 = vsyncadd [#allocation4], 4294965696  ;;  %vm381_vm0 = vcmask 1043456   ;;  %v1823_v13 = vld [vmem:[%s2645_s1 + $0x4] sm:$0xf]  ;;  %v2022_v15 = vld [vmem:[#allocation2 + $0x8] sm:$0xff]  }
  0x23   : > { %v1925_v14 = vld [vmem:[#allocation2] sm:$0xff]   ;;  %vm262_vm1 = vcmask 64512   ;;  %v383_v16 = vsel %vm381_vm0, %v1823_v13, 0  ;;  %v1930_v19 = vunpack.c.l.bf16 %v2022_v15  ;;  %v2024_v20 = vld [vmem:[#allocation2 + $0x18] sm:$0xff]   ;;  %v1855_v24 = vld [vmem:[%s2645_s1 + $0xc] sm:$0xf]  ;;  %v1931_v39 = vunpack.c.h.bf16 %v2022_v15 }
  0x24   : > { %v1926_v17 = vunpack.c.l.bf16 %v1925_v14  ;;  %v1927_v18 = vunpack.c.h.bf16 %v1925_v14  ;;  %v2025_v21 = vld [vmem:[#allocation2 + $0x20] sm:$0xff]   ;;  %392 = vmatpush.bf16.msra.mxu0 %v383_v16  ;;  %2042 = vmatpush.bf16.msra.mxu1 %v383_v16  ;;  %v1938_v22 = vunpack.c.l.bf16 %v2024_v20  ;;  %v2028_v23 = vld [vmem:[#allocation2 + $0x38] sm:$0xff]   ;;  %v1939_v26 = vunpack.c.h.bf16 %v2024_v20  ;;  %v1866_v29 = vld [vmem:[%s2645_s1 + $0x10] sm:$0xf] }
  0x25   : > { %v318_v25 = vld [vmem:[%s2645_s1] sm:$0xf]  ;;  %2044 = vmatpush.bf16.msra.mxu3 %v383_v16  ;;  %v743_v27 = vsel %vm381_vm0, %v1855_v24, 0  ;;  %2043 = vmatpush.bf16.msra.mxu2 %v383_v16  ;;  %v1942_v30 = vunpack.c.l.bf16 %v2025_v21  ;;  %v887_v32 = vsel %vm381_vm0, %v1866_v29, 0  ;;  %265 = vst.msk [vmem:[#allocation3 + $0x10] sm:$0xff] %vm262_vm1, %v1930_v19  ;;  %v1954_v33 = vunpack.c.l.bf16 %v2028_v23  ;;  %v2023_v36 = vld [vmem:[#allocation2 + $0x10] sm:$0xff]  }
  0x26   : > { %263 = vst.msk [vmem:[#allocation3] sm:$0xff] %vm262_vm1, %v1926_v17  ;;  %v475_v28 = vsel %vm381_vm0, %v318_v25, 0  ;;  %v2029_v31 = vld [vmem:[#allocation2 + $0x40] sm:$0xff]   ;;  %v1844_v34 = vld [vmem:[%s2645_s1 + $0x8] sm:$0xf]  ;;  %v1955_v35 = vunpack.c.h.bf16 %v2028_v23  ;;  %v1934_v41 = vunpack.c.l.bf16 %v2023_v36  ;;  %v1943_v42 = vunpack.c.h.bf16 %v2025_v21  ;;  %v2027_v46 = vld [vmem:[#allocation2 + $0x30] sm:$0xff]  }
  0x27   : > { %264 = vst.msk [vmem:[#allocation3 + $0x8] sm:$0xff] %vm262_vm1, %v1927_v18  ;;  %v599_v37 = vsel %vm381_vm0, %v1844_v34, 0  ;;  %v1958_v38 = vunpack.c.l.bf16 %v2029_v31  ;;  %v2026_v40 = vld [vmem:[#allocation2 + $0x28] sm:$0xff]   ;;  %v1959_v48 = vunpack.c.h.bf16 %v2029_v31  ;;  %v1950_v52 = vunpack.c.l.bf16 %v2027_v46  ;;  %v2031_v57 = vld [vmem:[#allocation2 + $0x50] sm:$0xff]   ;;  %v1888_v3 = vld [vmem:[%s2645_s1 + $0x18] sm:$0xf] }
  0x28   : > { %484 = vmatpush.bf16.msrb.mxu1 %v475_v28  ;;  %896 = vmatpush.bf16.msrb.mxu0 %v887_v32  ;;  %269 = vst.msk [vmem:[#allocation3 + $0x30] sm:$0xff] %vm262_vm1, %v1938_v22  ;;  %v2030_v43 = vld [vmem:[#allocation2 + $0x48] sm:$0xff]   ;;  %v1946_v45 = vunpack.c.l.bf16 %v2026_v40  ;;  %v1951_v54 = vunpack.c.h.bf16 %v2027_v46  ;;  %v1935_v56 = vunpack.c.h.bf16 %v2023_v36  ;;  %v1947_v59 = vunpack.c.h.bf16 %v2026_v40  ;;  %v1899_v15 = vld [vmem:[%s2645_s1 + $0x1c] sm:$0xf]  ;;  %v1877_v16 = vld [vmem:[%s2645_s1 + $0x14] sm:$0xf] }
  0x29   : > { %752 = vmatpush.bf16.msrb.mxu3 %v743_v27  ;;  %270 = vst.msk [vmem:[#allocation3 + $0x38] sm:$0xff] %vm262_vm1, %v1939_v26  ;;  %608 = vmatpush.bf16.msrb.mxu2 %v599_v37  ;;  %v1962_v50 = vunpack.c.l.bf16 %v2030_v43  ;;  %v1963_v61 = vunpack.c.h.bf16 %v2030_v43  ;;  %v1966_v63 = vunpack.c.l.bf16 %v2031_v57  ;;  %v1967_v0 = vunpack.c.h.bf16 %v2031_v57  ;;  %v1910_v17 = vld [vmem:[%s2645_s1 + $0x20] sm:$0xf] }
  0x2a   : > { %271 = vst.msk [vmem:[#allocation3 + $0x40] sm:$0xff] %vm262_vm1, %v1942_v30  ;;  %v1175_v10 = vsel %vm381_vm0, %v1888_v3, 0  ;;  %v1319_v20 = vsel %vm381_vm0, %v1899_v15, 0  ;;  %v1031_v21 = vsel %vm381_vm0, %v1877_v16, 0  ;;  %v1463_v22 = vsel %vm381_vm0, %v1910_v17, 0 }
  0x2b   : > { %277 = vst.msk [vmem:[#allocation3 + $0x70] sm:$0xff] %vm262_vm1, %v1954_v33 }
  0x2c   : > { %278 = vst.msk [vmem:[#allocation3 + $0x78] sm:$0xff] %vm262_vm1, %v1955_v35  ;;  %v290_v46 = vld [vmem:[#allocation3 + $0x10] sm:$0xff] }
  0x2d   : > { %279 = vst.msk [vmem:[#allocation3 + $0x80] sm:$0xff] %vm262_vm1, %v1958_v38  ;;  %v288_v37 = vld [vmem:[#allocation3] sm:$0xff] }
  0x2e   : > { %v319_v44 = vld [vmem:[#allocation3 + $0x1] sm:$0xff]  ;;  %v320_v47 = vld [vmem:[#allocation3 + $0x9] sm:$0xff]  ;;  %266 = vst.msk [vmem:[#allocation3 + $0x18] sm:$0xff] %vm262_vm1, %v1931_v39 }
  0x2f   : > { %v339_v49 = vpack.c.bf16 %v320_v47, %v319_v44  ;;  %267 = vst.msk [vmem:[#allocation3 + $0x20] sm:$0xff] %vm262_vm1, %v1934_v41  ;;  %v536_v18 = vld [vmem:[#allocation3 + $0x2] sm:$0xff]  ;;  %v537_v19 = vld [vmem:[#allocation3 + $0xa] sm:$0xff] }
  0x30   : > { %v325_v51 = vld [vmem:[#allocation3 + $0x31] sm:$0xff]  ;;  %272 = vst.msk [vmem:[#allocation3 + $0x48] sm:$0xff] %vm262_vm1, %v1943_v42  ;;  %v556_v25 = vpack.c.bf16 %v537_v19, %v536_v18  ;;  %v289_v38 = vld [vmem:[#allocation3 + $0x8] sm:$0xff] }
  0x31   : > { %1824 = vmatmul.msk.bf16.vlgmr.msra.gmra.mxu0 %vm262_vm1, %v339_v49  ;;  %v326_v53 = vld [vmem:[#allocation3 + $0x39] sm:$0xff]  ;;  %273 = vst.msk [vmem:[#allocation3 + $0x50] sm:$0xff] %vm262_vm1, %v1946_v45  ;;  %v308_v41 = vpack.c.bf16 %v289_v38, %v288_v37 }
  0x32   : > { %v342_v55 = vpack.c.bf16 %v326_v53, %v325_v51  ;;  %280 = vst.msk [vmem:[#allocation3 + $0x88] sm:$0xff] %vm262_vm1, %v1959_v48  ;;  %1472 = vmatpush.bf16.msra.mxu0 %v1463_v22  ;;  %v684_v51 = vld [vmem:[#allocation3 + $0x32] sm:$0xff] }
  0x33   : > { %v333_v58 = vld [vmem:[#allocation3 + $0x71] sm:$0xff]  ;;  %281 = vst.msk [vmem:[#allocation3 + $0x90] sm:$0xff] %vm262_vm1, %v1962_v50 }
  0x34   : > { %1827 = vmatmul.msk.bf16.vlgmr.msra.gmra.mxu1 %vm262_vm1, %v342_v55  ;;  %v334_v60 = vld [vmem:[#allocation3 + $0x79] sm:$0xff]  ;;  %275 = vst.msk [vmem:[#allocation3 + $0x60] sm:$0xff] %vm262_vm1, %v1950_v52 }
  0x35   : > { %v346_v62 = vpack.c.bf16 %v334_v60, %v333_v58  ;;  %276 = vst.msk [vmem:[#allocation3 + $0x68] sm:$0xff] %vm262_vm1, %v1951_v54  ;;  %v321_v1 = vld [vmem:[#allocation3 + $0x11] sm:$0xff]  ;;  %1040 = vmatpush.bf16.msra.mxu1 %v1031_v21  ;;  %v685_v52 = vld [vmem:[#allocation3 + $0x3a] sm:$0xff] }
  0x36   : > { %268 = vst.msk [vmem:[#allocation3 + $0x28] sm:$0xff] %vm262_vm1, %v1935_v56  ;;  %v322_v2 = vld [vmem:[#allocation3 + $0x19] sm:$0xff]  ;;  %v702_v57 = vpack.c.bf16 %v685_v52, %v684_v51  ;;  %v302_v51 = vld [vmem:[#allocation3 + $0x70] sm:$0xff] }
  0x37   : > { %1831 = vmatmul.msk.bf16.vlgmr.msra.gmra.mxu3 %vm262_vm1, %v346_v62  ;;  %274 = vst.msk [vmem:[#allocation3 + $0x58] sm:$0xff] %vm262_vm1, %v1947_v59  ;;  %v340_v6 = vpack.c.bf16 %v322_v2, %v321_v1  ;;  %v327_v7 = vld [vmem:[#allocation3 + $0x41] sm:$0xff]  ;;  %v680_v33 = vld [vmem:[#allocation3 + $0x12] sm:$0xff] }
  0x38   : > { %282 = vst.msk [vmem:[#allocation3 + $0x98] sm:$0xff] %vm262_vm1, %v1963_v61  ;;  %v328_v8 = vld [vmem:[#allocation3 + $0x49] sm:$0xff]  ;;  %1328 = vmatpush.bf16.msra.mxu3 %v1319_v20  ;;  %v681_v34 = vld [vmem:[#allocation3 + $0x1a] sm:$0xff] }
  0x39   : > { %283 = vst.msk [vmem:[#allocation3 + $0xa0] sm:$0xff] %vm262_vm1, %v1966_v63  ;;  %v343_v11 = vpack.c.bf16 %v328_v8, %v327_v7  ;;  %v335_v12 = vld [vmem:[#allocation3 + $0x81] sm:$0xff]  ;;  %v824_v35 = vld [vmem:[#allocation3 + $0x13] sm:$0xff]  ;;  %v700_v39 = vpack.c.bf16 %v681_v34, %v680_v33  ;;  %v687_v61 = vld [vmem:[#allocation3 + $0x4a] sm:$0xff] }
  0x3a   : > { %284 = vst.msk [vmem:[#allocation3 + $0xa8] sm:$0xff] %vm262_vm1, %v1967_v0  ;;  %v336_v13 = vld [vmem:[#allocation3 + $0x89] sm:$0xff]  ;;  %v825_v36 = vld [vmem:[#allocation3 + $0x1b] sm:$0xff]  ;;  %v828_v53 = vld [vmem:[#allocation3 + $0x33] sm:$0xff] }
  0x3b   : > { %v347_v14 = vpack.c.bf16 %v336_v13, %v335_v12  ;;  %v844_v40 = vpack.c.bf16 %v825_v36, %v824_v35  ;;  %v291_v47 = vld [vmem:[#allocation3 + $0x18] sm:$0xff]  ;;  %v292_v55 = vld [vmem:[#allocation3 + $0x20] sm:$0xff]  ;;  %v831_v63 = vld [vmem:[#allocation3 + $0x4b] sm:$0xff] }
  0x3c   : > { %v331_v4 = vld [vmem:[#allocation3 + $0x61] sm:$0xff]  ;;  %v332_v5 = vld [vmem:[#allocation3 + $0x69] sm:$0xff]  ;;  %v309_v50 = vpack.c.bf16 %v291_v47, %v290_v46  ;;  %v295_v1 = vld [vmem:[#allocation3 + $0x38] sm:$0xff] }
  0x3d   : > { %v345_v9 = vpack.c.bf16 %v332_v5, %v331_v4  ;;  %v323_v23 = vld [vmem:[#allocation3 + $0x21] sm:$0xff]  ;;  %v324_v24 = vld [vmem:[#allocation3 + $0x29] sm:$0xff]  ;;  %v303_v52 = vld [vmem:[#allocation3 + $0x78] sm:$0xff] }
  0x3e   : > { %v341_v26 = vpack.c.bf16 %v324_v24, %v323_v23  ;;  %v329_v27 = vld [vmem:[#allocation3 + $0x51] sm:$0xff]  ;;  %v330_v28 = vld [vmem:[#allocation3 + $0x59] sm:$0xff]  ;;  %v682_v42 = vld [vmem:[#allocation3 + $0x22] sm:$0xff] }
  0x3f   : > { %1830 = vmatmul.msk.bf16.vlgmr.msra.gmra.mxu2 %vm262_vm1, %v345_v9  ;;  %v344_v29 = vpack.c.bf16 %v330_v28, %v329_v27  ;;  %v337_v30 = vld [vmem:[#allocation3 + $0x91] sm:$0xff]  ;;  %v826_v44 = vld [vmem:[#allocation3 + $0x23] sm:$0xff]  ;;  %v829_v54 = vld [vmem:[#allocation3 + $0x3b] sm:$0xff] }
  0x40   : > { %1184 = vmatpush.bf16.msra.mxu2 %v1175_v10  ;;  %v338_v31 = vld [vmem:[#allocation3 + $0x99] sm:$0xff]  ;;  %v683_v43 = vld [vmem:[#allocation3 + $0x2a] sm:$0xff]  ;;  %v846_v58 = vpack.c.bf16 %v829_v54, %v828_v53  ;;  %v686_v60 = vld [vmem:[#allocation3 + $0x42] sm:$0xff] }
  0x41   : > { %1825 = vmatmul.msk.bf16.gmra.mxu0 %vm262_vm1, %v340_v6  ;;  %v348_v32 = vpack.c.bf16 %v338_v31, %v337_v30  ;;  %v827_v45 = vld [vmem:[#allocation3 + $0x2b] sm:$0xff]  ;;  %v701_v48 = vpack.c.bf16 %v683_v43, %v682_v42  ;;  %v830_v62 = vld [vmem:[#allocation3 + $0x43] sm:$0xff]  ;;  %v703_v2 = vpack.c.bf16 %v687_v61, %v686_v60  ;;  %v689_v6 = vld [vmem:[#allocation3 + $0x5a] sm:$0xff] }
  0x42   : > { %v845_v49 = vpack.c.bf16 %v827_v45, %v826_v44  ;;  %v293_v56 = vld [vmem:[#allocation3 + $0x28] sm:$0xff]  ;;  %v294_v0 = vld [vmem:[#allocation3 + $0x30] sm:$0xff]  ;;  %v847_v3 = vpack.c.bf16 %v831_v63, %v830_v62  ;;  %v833_v8 = vld [vmem:[#allocation3 + $0x5b] sm:$0xff] }
  0x43   : > { %v310_v59 = vpack.c.bf16 %v293_v56, %v292_v55  ;;  %v311_v4 = vpack.c.bf16 %v295_v1, %v294_v0  ;;  %v688_v5 = vld [vmem:[#allocation3 + $0x52] sm:$0xff]  ;;  %v296_v9 = vld [vmem:[#allocation3 + $0x40] sm:$0xff]  ;;  %v297_v10 = vld [vmem:[#allocation3 + $0x48] sm:$0xff]  ;;  %v315_v56 = vpack.c.bf16 %v303_v52, %v302_v51 }
  0x44   : > { %1828 = vmatmul.msk.bf16.gmra.mxu1 %vm262_vm1, %v343_v11  ;;  %v832_v7 = vld [vmem:[#allocation3 + $0x53] sm:$0xff]  ;;  %v704_v11 = vpack.c.bf16 %v689_v6, %v688_v5  ;;  %v312_v13 = vpack.c.bf16 %v297_v10, %v296_v9  ;;  %v691_v15 = vld [vmem:[#allocation3 + $0x6a] sm:$0xff]  ;;  %v837_v31 = vld [vmem:[#allocation3 + $0x7b] sm:$0xff] }
  0x45   : > { %v848_v12 = vpack.c.bf16 %v833_v8, %v832_v7  ;;  %v834_v16 = vld [vmem:[#allocation3 + $0x63] sm:$0xff]  ;;  %v835_v17 = vld [vmem:[#allocation3 + $0x6b] sm:$0xff]  ;;  %v299_v19 = vld [vmem:[#allocation3 + $0x58] sm:$0xff] }
  0x46   : > { %v298_v18 = vld [vmem:[#allocation3 + $0x50] sm:$0xff]  ;;  %v849_v21 = vpack.c.bf16 %v835_v17, %v834_v16  ;;  %v301_v33 = vld [vmem:[#allocation3 + $0x68] sm:$0xff]  ;;  %v697_v0 = vld [vmem:[#allocation3 + $0x9a] sm:$0xff] }
  0x47   : > { %1832 = vmatmul.msk.bf16.gmra.mxu3 %vm262_vm1, %v347_v14  ;;  %v690_v14 = vld [vmem:[#allocation3 + $0x62] sm:$0xff]  ;;  %v313_v23 = vpack.c.bf16 %v299_v19, %v298_v18  ;;  %v692_v27 = vld [vmem:[#allocation3 + $0x72] sm:$0xff]  ;;  %v695_v44 = vld [vmem:[#allocation3 + $0x8a] sm:$0xff] }
  0x48   : > { %v705_v20 = vpack.c.bf16 %v691_v15, %v690_v14  ;;  %v836_v30 = vld [vmem:[#allocation3 + $0x73] sm:$0xff]  ;;  %v694_v43 = vld [vmem:[#allocation3 + $0x82] sm:$0xff]  ;;  %v839_v47 = vld [vmem:[#allocation3 + $0x8b] sm:$0xff] }
  0x49   : > { %v850_v35 = vpack.c.bf16 %v837_v31, %v836_v30  ;;  %v838_v46 = vld [vmem:[#allocation3 + $0x83] sm:$0xff]  ;;  %v707_v53 = vpack.c.bf16 %v695_v44, %v694_v43  ;;  %v696_v62 = vld [vmem:[#allocation3 + $0x92] sm:$0xff] }
  0x4a   : > { %v851_v54 = vpack.c.bf16 %v839_v47, %v838_v46  ;;  %v840_v1 = vld [vmem:[#allocation3 + $0x93] sm:$0xff]  ;;  %v305_v5 = vld [vmem:[#allocation3 + $0x88] sm:$0xff]  ;;  %v708_v6 = vpack.c.bf16 %v697_v0, %v696_v62  ;;  %v1115_v62 = vld [vmem:[#allocation3 + $0x3c] sm:$0xff] }
  0x4b   : > { %v1112_v16 = vld [vmem:[#allocation3 + $0x24] sm:$0xff]  ;;  %v1113_v17 = vld [vmem:[#allocation3 + $0x2c] sm:$0xff] }
  0x4c   : > { %v2418_v30 = vpack.c.bf16 %v1113_v17, %v1112_v16  ;;  %v306_v31 = vld [vmem:[#allocation3 + $0x90] sm:$0xff]  ;;  %v698_v43 = vld [vmem:[#allocation3 + $0xa2] sm:$0xff] }
  0x4d   : > { %v1257_v16 = vld [vmem:[#allocation3 + $0x2d] sm:$0xff] }
  0x4f   : > { %1845 = vmatmul.msk.bf16.vlgmr.msrb.gmra.mxu2 %vm262_vm1, %v556_v25 }
  0x51   : > { %1826 = vmatmul.msk.bf16.gmra.mxu0 %vm262_vm1, %v341_v26 }
  0x54   : > { %1829 = vmatmul.msk.bf16.gmra.mxu1 %vm262_vm1, %v344_v29  ;;  %v693_v29 = vld [vmem:[#allocation3 + $0x7a] sm:$0xff] }
  0x55   : > { %v706_v34 = vpack.c.bf16 %v693_v29, %v692_v27 }
  0x57   : > { %1833 = vmatmul.msk.bf16.gmra.mxu3 %vm262_vm1, %v348_v32  ;;  %v300_v32 = vld [vmem:[#allocation3 + $0x60] sm:$0xff] }
  0x58   : > { %v314_v37 = vpack.c.bf16 %v301_v33, %v300_v32  ;;  %v307_v32 = vld [vmem:[#allocation3 + $0x98] sm:$0xff] }
  0x5f   : > { %1846 = vmatmul.msk.bf16.gmra.mxu2 %vm262_vm1, %v700_v39 }
  0x61   : > { %1867 = vmatmul.msk.bf16.vlgmr.msrb.gmra.mxu0 %vm262_vm1, %v844_v40 }
  0x64   : > { %1834 = vmatmul.msk.bf16.vlgmr.msrb.gmra.mxu1 %vm262_vm1, %v308_v41 }
  0x67   : > { %1856 = vmatmul.msk.bf16.vlgmr.msrb.gmra.mxu3 %vm262_vm1, %v700_v39 }
  0x6f   : > { %1847 = vmatmul.msk.bf16.gmra.mxu2 %vm262_vm1, %v701_v48 }
  0x71   : > { %1868 = vmatmul.msk.bf16.gmra.mxu0 %vm262_vm1, %v845_v49  ;;  %v2390_v49 = vld [vmem:[#allocation2 + $0x58] sm:$0xff]  }
  0x74   : > { %1835 = vmatmul.msk.bf16.gmra.mxu1 %vm262_vm1, %v309_v50  ;;  %v1970_v50 = vunpack.c.l.bf16 %v2390_v49 }
  0x76   : > { %285 = vst.msk [vmem:[#allocation3 + $0xb0] sm:$0xff] %vm262_vm1, %v1970_v50 }
  0x77   : > { %1857 = vmatmul.msk.bf16.gmra.mxu3 %vm262_vm1, %v701_v48 }
  0x7d   : > { %v699_v44 = vld [vmem:[#allocation3 + $0xaa] sm:$0xff] }
  0x7e   : > { %v709_v52 = vpack.c.bf16 %v699_v44, %v698_v43  ;;  %v1403_v43 = vld [vmem:[#allocation3 + $0x3e] sm:$0xff] }
  0x7f   : > { %1848 = vmatmul.msk.bf16.gmra.mxu2 %vm262_vm1, %v702_v57 }
  0x81   : > { %1869 = vmatmul.msk.bf16.gmra.mxu0 %vm262_vm1, %v846_v58 }
  0x84   : > { %1836 = vmatmul.msk.bf16.gmra.mxu1 %vm262_vm1, %v310_v59 }
  0x87   : > { %1858 = vmatmul.msk.bf16.gmra.mxu3 %vm262_vm1, %v702_v57 }
  0x8f   : > { %1849 = vmatmul.msk.bf16.gmra.mxu2 %vm262_vm1, %v703_v2 }
  0x91   : > { %1870 = vmatmul.msk.bf16.gmra.mxu0 %vm262_vm1, %v847_v3 }
  0x94   : > { %1837 = vmatmul.msk.bf16.gmra.mxu1 %vm262_vm1, %v311_v4  ;;  %v304_v4 = vld [vmem:[#allocation3 + $0x80] sm:$0xff] }
  0x95   : > { %v316_v9 = vpack.c.bf16 %v305_v5, %v304_v4  ;;  %v1401_v4 = vld [vmem:[#allocation3 + $0x2e] sm:$0xff] }
  0x97   : > { %1859 = vmatmul.msk.bf16.gmra.mxu3 %vm262_vm1, %v703_v2  ;;  %v841_v2 = vld [vmem:[#allocation3 + $0x9b] sm:$0xff] }
  0x98   : > { %v852_v7 = vpack.c.bf16 %v841_v2, %v840_v1 }
  0x9f   : > { %1850 = vmatmul.msk.bf16.gmra.mxu2 %vm262_vm1, %v704_v11 }
  0xa1   : > { %1871 = vmatmul.msk.bf16.gmra.mxu0 %vm262_vm1, %v848_v12 }
  0xa4   : > { %1838 = vmatmul.msk.bf16.gmra.mxu1 %vm262_vm1, %v312_v13 }
  0xa7   : > { %1860 = vmatmul.msk.bf16.gmra.mxu3 %vm262_vm1, %v704_v11 }
  0xae   : > { %v2356_v22 = vpop.f32.mrf.mxu0 }
  0xaf   : > { %1851 = vmatmul.msk.bf16.gmra.mxu2 %vm262_vm1, %v705_v20 }
  0xb1   : > { %v2359_v24 = vpop.f32.mrf.mxu1  ;;  %1872 = vmatmul.msk.bf16.gmra.mxu0 %vm262_vm1, %v849_v21  ;;  %v842_v21 = vld [vmem:[#allocation3 + $0xa3] sm:$0xff] }
  0xb4   : > { %1839 = vmatmul.msk.bf16.gmra.mxu1 %vm262_vm1, %v313_v23  ;;  %v843_v23 = vld [vmem:[#allocation3 + $0xab] sm:$0xff] }
  0xb5   : > { %v853_v33 = vpack.c.bf16 %v843_v23, %v842_v21 }
  0xb6   : > { %v2363_v25 = vpop.f32.mrf.mxu0 }
  0xb7   : > { %1861 = vmatmul.msk.bf16.gmra.mxu3 %vm262_vm1, %v705_v20 }
  0xb9   : > { %v2366_v26 = vpop.f32.mrf.mxu1 }
  0xba   : > { %v2368_v28 = vpop.f32.mrf.mxu3 }
  0xbe   : > { %v2370_v36 = vpop.f32.mrf.mxu0 }
  0xbf   : > { %1852 = vmatmul.msk.bf16.gmra.mxu2 %vm262_vm1, %v706_v34 }
  0xc1   : > { %v2373_v38 = vpop.f32.mrf.mxu1  ;;  %1873 = vmatmul.msk.bf16.gmra.mxu0 %vm262_vm1, %v850_v35 }
  0xc2   : > { %v2376_v39 = vpop.f32.mrf.mxu3  ;;  %v2378_v40 = vpop.f32.mrf.mxu2 }
  0xc4   : > { %1840 = vmatmul.msk.bf16.gmra.mxu1 %vm262_vm1, %v314_v37  ;;  %v317_v37 = vpack.c.bf16 %v307_v32, %v306_v31  ;;  %v1117_v31 = vld [vmem:[#allocation3 + $0x4c] sm:$0xff] }
  0xc6   : > { %v2381_v41 = vpop.f32.mrf.mxu0 }
  0xc7   : > { %1862 = vmatmul.msk.bf16.gmra.mxu3 %vm262_vm1, %v706_v34 }
  0xc9   : > { %v2384_v42 = vpop.f32.mrf.mxu1 }
  0xca   : > { %v2386_v45 = vpop.f32.mrf.mxu3  ;;  %v2388_v48 = vpop.f32.mrf.mxu2 }
  0xce   : > { %v2394_v55 = vpop.f32.mrf.mxu0 }
  0xcf   : > { %1853 = vmatmul.msk.bf16.gmra.mxu2 %vm262_vm1, %v707_v53 }
  0xd1   : > { %v2397_v57 = vpop.f32.mrf.mxu1  ;;  %1874 = vmatmul.msk.bf16.gmra.mxu0 %vm262_vm1, %v851_v54 }
  0xd2   : > { %v2400_v58 = vpop.f32.mrf.mxu3  ;;  %v610_v59 = vpop.f32.mrf.mxu2 }
  0xd4   : > { %1841 = vmatmul.msk.bf16.gmra.mxu1 %vm262_vm1, %v315_v56 }
  0xd6   : > { %v2403_v60 = vpop.f32.mrf.mxu0 }
  0xd7   : > { %1863 = vmatmul.msk.bf16.gmra.mxu3 %vm262_vm1, %v707_v53 }
  0xd9   : > { %v2406_v61 = vpop.f32.mrf.mxu1 }
  0xda   : > { %v2408_v63 = vpop.f32.mrf.mxu3  ;;  %v612_v3 = vpop.f32.mrf.mxu2 }
  0xde   : > { %v898_v8 = vpop.f32.mrf.mxu0 }
  0xdf   : > { %1854 = vmatmul.msk.bf16.gmra.mxu2 %vm262_vm1, %v708_v6 }
  0xe1   : > { %v486_v10 = vpop.f32.mrf.mxu1  ;;  %1875 = vmatmul.msk.bf16.gmra.mxu0 %vm262_vm1, %v852_v7 }
  0xe2   : > { %v2412_v11 = vpop.f32.mrf.mxu3  ;;  %v487_v12 = vadd.f32 %v486_v10, %v2356_v22  ;;  %v615_v13 = vpop.f32.mrf.mxu2 }
  0xe4   : > { %1842 = vmatmul.msk.bf16.gmra.mxu1 %vm262_vm1, %v316_v9  ;;  %v660_v14 = vadd.f32 %v610_v59, %v487_v12  ;;  %v1114_v59 = vld [vmem:[#allocation3 + $0x34] sm:$0xff]  ;;  %v969_v9 = vld [vmem:[#allocation3 + $0x1c] sm:$0xff] }
  0xe6   : > { %v900_v15 = vpop.f32.mrf.mxu0 }
  0xe7   : > { %1864 = vmatmul.msk.bf16.gmra.mxu3 %vm262_vm1, %v708_v6  ;;  %v2431_v6 = vpack.c.bf16 %v1115_v62, %v1114_v59 }
  0xe9   : > { %v488_v18 = vpop.f32.mrf.mxu1 }
  0xea   : > { %v754_v19 = vpop.f32.mrf.mxu3  ;;  %v489_v20 = vadd.f32 %v488_v18, %v2363_v25  ;;  %v617_v27 = vpop.f32.mrf.mxu2 }
  0xeb   : > { %v804_v29 = vadd.f32 %v754_v19, %v660_v14 }
  0xec   : > { %v661_v22 = vadd.f32 %v612_v3, %v489_v20  ;;  %v1400_v3 = vld [vmem:[#allocation3 + $0x26] sm:$0xff] }
  0xed   : > { %v2420_v34 = vadd.f32 %v898_v8, %v804_v29  ;;  %v968_v8 = vld [vmem:[#allocation3 + $0x14] sm:$0xff]  ;;  %v1420_v10 = vpack.c.bf16 %v1401_v4, %v1400_v3 }
  0xee   : > { %v903_v35 = vpop.f32.mrf.mxu0  ;;  %v988_v14 = vpack.c.bf16 %v969_v9, %v968_v8 }
  0xef   : > { %1889 = vmatmul.msk.bf16.vlgmr.msra.gmra.mxu2 %vm262_vm1, %v2418_v30 }
  0xf1   : > { %v491_v25 = vpop.f32.mrf.mxu1  ;;  %1876 = vmatmul.msk.bf16.gmra.mxu0 %vm262_vm1, %v853_v33 }
  0xf2   : > { %v756_v46 = vpop.f32.mrf.mxu3  ;;  %v492_v47 = vadd.f32 %v491_v25, %v2370_v36  ;;  %v620_v50 = vpop.f32.mrf.mxu2 }
  0xf3   : > { %v805_v51 = vadd.f32 %v756_v46, %v661_v22  ;;  %v1116_v22 = vld [vmem:[#allocation3 + $0x44] sm:$0xff] }
  0xf4   : > { %1843 = vmatmul.msk.bf16.gmra.mxu1 %vm262_vm1, %v317_v37  ;;  %v662_v53 = vadd.f32 %v615_v13, %v492_v47  ;;  %v1402_v37 = vld [vmem:[#allocation3 + $0x36] sm:$0xff]  ;;  %v2444_v25 = vpack.c.bf16 %v1117_v31, %v1116_v22 }
  0xf5   : > { %v2427_v54 = vadd.f32 %v900_v15, %v805_v51  ;;  %v1256_v15 = vld [vmem:[#allocation3 + $0x25] sm:$0xff]  ;;  %v1421_v47 = vpack.c.bf16 %v1403_v43, %v1402_v37 }
  0xf6   : > { %v905_v56 = vpop.f32.mrf.mxu0  ;;  %v1276_v21 = vpack.c.bf16 %v1257_v16, %v1256_v15  ;;  %v1121_v37 = vld [vmem:[#allocation3 + $0x6c] sm:$0xff] }
  0xf7   : > { %1865 = vmatmul.msk.bf16.gmra.mxu3 %vm262_vm1, %v709_v52  ;;  %v1258_v52 = vld [vmem:[#allocation3 + $0x35] sm:$0xff] }
  0xf9   : > { %v493_v0 = vpop.f32.mrf.mxu1 }
  0xfa   : > { %v759_v1 = vpop.f32.mrf.mxu3  ;;  %v494_v2 = vadd.f32 %v493_v0, %v2381_v41  ;;  %v622_v36 = vpop.f32.mrf.mxu2 }
  0xfb   : > { %v806_v5 = vadd.f32 %v759_v1, %v662_v53  ;;  %v1259_v53 = vld [vmem:[#allocation3 + $0x3d] sm:$0xff] }
  0xfc   : > { %v663_v7 = vadd.f32 %v617_v27, %v494_v2  ;;  %v1277_v1 = vpack.c.bf16 %v1259_v53, %v1258_v52 }
  0xfd   : > { %v2433_v12 = vadd.f32 %v903_v35, %v806_v5  ;;  %v1119_v5 = vld [vmem:[#allocation3 + $0x5c] sm:$0xff] }
  0xfe   : > { %v908_v13 = vpop.f32.mrf.mxu0 }
  0xff   : > { %1890 = vmatmul.msk.bf16.gmra.mxu2 %vm262_vm1, %v2431_v6 }
 0x101   : > { %v496_v41 = vpop.f32.mrf.mxu1  ;;  %1911 = vmatmul.msk.bf16.vlgmr.msra.gmra.mxu0 %vm262_vm1, %v1420_v10  ;;  %v1404_v10 = vld [vmem:[#allocation3 + $0x46] sm:$0xff] }
 0x102   : > { %v761_v17 = vpop.f32.mrf.mxu3  ;;  %v497_v18 = vadd.f32 %v496_v41, %v2394_v55  ;;  %v625_v19 = vpop.f32.mrf.mxu2 }
 0x103   : > { %v807_v20 = vadd.f32 %v761_v17, %v663_v7 }
 0x104   : > { %1878 = vmatmul.msk.bf16.vlgmr.msra.gmra.mxu1 %vm262_vm1, %v988_v14  ;;  %v664_v23 = vadd.f32 %v620_v50, %v497_v18  ;;  %v1260_v18 = vld [vmem:[#allocation3 + $0x45] sm:$0xff] }
 0x105   : > { %v2440_v27 = vadd.f32 %v905_v56, %v807_v20 }
 0x106   : > { %v910_v29 = vpop.f32.mrf.mxu0 }
 0x107   : > { %1900 = vmatmul.msk.bf16.vlgmr.msra.gmra.mxu3 %vm262_vm1, %v1276_v21 }
 0x109   : > { %v498_v32 = vpop.f32.mrf.mxu1 }
 0x10a   : > { %v764_v33 = vpop.f32.mrf.mxu3  ;;  %v499_v35 = vadd.f32 %v498_v32, %v2403_v60  ;;  %v627_v55 = vpop.f32.mrf.mxu2 }
 0x10b   : > { %v808_v44 = vadd.f32 %v764_v33, %v664_v23 }
 0x10c   : > { %v665_v46 = vadd.f32 %v622_v36, %v499_v35  ;;  %v1118_v36 = vld [vmem:[#allocation3 + $0x54] sm:$0xff]  ;;  %v1120_v35 = vld [vmem:[#allocation3 + $0x64] sm:$0xff] }
 0x10d   : > { %v2446_v50 = vadd.f32 %v908_v13, %v808_v44  ;;  %v2458_v15 = vpack.c.bf16 %v1119_v5, %v1118_v36  ;;  %v2472_v52 = vpack.c.bf16 %v1121_v37, %v1120_v35 }
 0x10e   : > { %v913_v51 = vpop.f32.mrf.mxu0 }
 0x10f   : > { %1891 = vmatmul.msk.bf16.gmra.mxu2 %vm262_vm1, %v2444_v25 }
 0x111   : > { %v501_v56 = vpop.f32.mrf.mxu1  ;;  %1912 = vmatmul.msk.bf16.gmra.mxu0 %vm262_vm1, %v1421_v47 }
 0x112   : > { %v766_v60 = vpop.f32.mrf.mxu3  ;;  %v502_v59 = vadd.f32 %v501_v56, %v2359_v24  ;;  %v630_v62 = vpop.f32.mrf.mxu2  ;;  %v1405_v24 = vld [vmem:[#allocation3 + $0x4e] sm:$0xff] }
 0x113   : > { %v809_v0 = vadd.f32 %v766_v60, %v665_v46  ;;  %v1406_v46 = vld [vmem:[#allocation3 + $0x56] sm:$0xff] }
 0x114   : > { %1879 = vmatmul.msk.bf16.gmra.mxu1 %vm262_vm1, %v2418_v30  ;;  %v666_v2 = vadd.f32 %v625_v19, %v502_v59  ;;  %v1422_v30 = vpack.c.bf16 %v1405_v24, %v1404_v10  ;;  %v1261_v19 = vld [vmem:[#allocation3 + $0x4d] sm:$0xff]  ;;  %v1262_v59 = vld [vmem:[#allocation3 + $0x55] sm:$0xff] }
 0x115   : > { %v2454_v3 = vadd.f32 %v910_v29, %v809_v0  ;;  %v1278_v22 = vpack.c.bf16 %v1261_v19, %v1260_v18  ;;  %v1123_v10 = vld [vmem:[#allocation3 + $0x7c] sm:$0xff] }
 0x116   : > { %v915_v4 = vpop.f32.mrf.mxu0 }
 0x117   : > { %1901 = vmatmul.msk.bf16.gmra.mxu3 %vm262_vm1, %v1277_v1 }
 0x119   : > { %v503_v7 = vpop.f32.mrf.mxu1 }
 0x11a   : > { %v769_v8 = vpop.f32.mrf.mxu3  ;;  %v504_v9 = vadd.f32 %v503_v7, %v2366_v26  ;;  %v632_v13 = vpop.f32.mrf.mxu2 }
 0x11b   : > { %v810_v14 = vadd.f32 %v769_v8, %v666_v2 }
 0x11c   : > { %v667_v16 = vadd.f32 %v627_v55, %v504_v9  ;;  %v1122_v9 = vld [vmem:[#allocation3 + $0x74] sm:$0xff] }
 0x11d   : > { %v2460_v41 = vadd.f32 %v913_v51, %v810_v14  ;;  %v2486_v18 = vpack.c.bf16 %v1123_v10, %v1122_v9 }
 0x11e   : > { %v918_v17 = vpop.f32.mrf.mxu0 }
 0x11f   : > { %1892 = vmatmul.msk.bf16.gmra.mxu2 %vm262_vm1, %v2458_v15 }
 0x121   : > { %v506_v20 = vpop.f32.mrf.mxu1  ;;  %1913 = vmatmul.msk.bf16.gmra.mxu0 %vm262_vm1, %v1422_v30 }
 0x122   : > { %v771_v26 = vpop.f32.mrf.mxu3  ;;  %v507_v21 = vadd.f32 %v506_v20, %v2373_v38  ;;  %v635_v23 = vpop.f32.mrf.mxu2  ;;  %v1407_v38 = vld [vmem:[#allocation3 + $0x5e] sm:$0xff] }
 0x123   : > { %v811_v29 = vadd.f32 %v771_v26, %v667_v16  ;;  %v1408_v16 = vld [vmem:[#allocation3 + $0x66] sm:$0xff] }
 0x124   : > { %1880 = vmatmul.msk.bf16.gmra.mxu1 %vm262_vm1, %v2431_v6  ;;  %v668_v31 = vadd.f32 %v630_v62, %v507_v21  ;;  %v1423_v6 = vpack.c.bf16 %v1407_v38, %v1406_v46  ;;  %v1263_v62 = vld [vmem:[#allocation3 + $0x5d] sm:$0xff]  ;;  %v1264_v21 = vld [vmem:[#allocation3 + $0x65] sm:$0xff] }
 0x125   : > { %v2468_v32 = vadd.f32 %v915_v4, %v811_v29  ;;  %v1279_v36 = vpack.c.bf16 %v1263_v62, %v1262_v59  ;;  %v1125_v46 = vld [vmem:[#allocation3 + $0x8c] sm:$0xff] }
 0x126   : > { %v920_v33 = vpop.f32.mrf.mxu0 }
 0x127   : > { %1902 = vmatmul.msk.bf16.gmra.mxu3 %vm262_vm1, %v1278_v22 }
 0x129   : > { %v508_v43 = vpop.f32.mrf.mxu1 }
 0x12a   : > { %v774_v55 = vpop.f32.mrf.mxu3  ;;  %v509_v44 = vadd.f32 %v508_v43, %v2384_v42  ;;  %v637_v47 = vpop.f32.mrf.mxu2 }
 0x12b   : > { %v812_v51 = vadd.f32 %v774_v55, %v668_v31 }
 0x12c   : > { %v669_v53 = vadd.f32 %v632_v13, %v509_v44  ;;  %v1124_v44 = vld [vmem:[#allocation3 + $0x84] sm:$0xff] }
 0x12d   : > { %v2474_v56 = vadd.f32 %v918_v17, %v812_v51  ;;  %v2500_v59 = vpack.c.bf16 %v1125_v46, %v1124_v44 }
 0x12e   : > { %v923_v60 = vpop.f32.mrf.mxu0 }
 0x12f   : > { %1893 = vmatmul.msk.bf16.gmra.mxu2 %vm262_vm1, %v2472_v52 }
 0x131   : > { %v511_v0 = vpop.f32.mrf.mxu1  ;;  %1914 = vmatmul.msk.bf16.gmra.mxu0 %vm262_vm1, %v1423_v6 }
 0x132   : > { %v776_v42 = vpop.f32.mrf.mxu3  ;;  %v512_v1 = vadd.f32 %v511_v0, %v2397_v57  ;;  %v640_v2 = vpop.f32.mrf.mxu2  ;;  %v1409_v57 = vld [vmem:[#allocation3 + $0x6e] sm:$0xff] }
 0x133   : > { %v813_v4 = vadd.f32 %v776_v42, %v669_v53  ;;  %v1410_v53 = vld [vmem:[#allocation3 + $0x76] sm:$0xff] }
 0x134   : > { %1881 = vmatmul.msk.bf16.gmra.mxu1 %vm262_vm1, %v2444_v25  ;;  %v670_v5 = vadd.f32 %v635_v23, %v512_v1  ;;  %v1424_v25 = vpack.c.bf16 %v1409_v57, %v1408_v16  ;;  %v1265_v23 = vld [vmem:[#allocation3 + $0x6d] sm:$0xff]  ;;  %v1266_v1 = vld [vmem:[#allocation3 + $0x75] sm:$0xff] }
 0x135   : > { %v2482_v7 = vadd.f32 %v920_v33, %v813_v4  ;;  %v1280_v35 = vpack.c.bf16 %v1265_v23, %v1264_v21  ;;  %v1127_v16 = vld [vmem:[#allocation3 + $0x9c] sm:$0xff] }
 0x136   : > { %v925_v8 = vpop.f32.mrf.mxu0 }
 0x137   : > { %1903 = vmatmul.msk.bf16.gmra.mxu3 %vm262_vm1, %v1279_v36 }
 0x139   : > { %v513_v24 = vpop.f32.mrf.mxu1 }
 0x13a   : > { %v779_v13 = vpop.f32.mrf.mxu3  ;;  %v514_v14 = vadd.f32 %v513_v24, %v2406_v61  ;;  %v642_v30 = vpop.f32.mrf.mxu2 }
 0x13b   : > { %v814_v17 = vadd.f32 %v779_v13, %v670_v5 }
 0x13c   : > { %v671_v19 = vadd.f32 %v637_v47, %v514_v14  ;;  %v1126_v14 = vld [vmem:[#allocation3 + $0x94] sm:$0xff] }
 0x13d   : > { %v2488_v20 = vadd.f32 %v923_v60, %v814_v17  ;;  %v2514_v21 = vpack.c.bf16 %v1127_v16, %v1126_v14 }
 0x13e   : > { %v928_v26 = vpop.f32.mrf.mxu0 }
 0x13f   : > { %1894 = vmatmul.msk.bf16.gmra.mxu2 %vm262_vm1, %v2486_v18 }
 0x141   : > { %v516_v29 = vpop.f32.mrf.mxu1  ;;  %1915 = vmatmul.msk.bf16.gmra.mxu0 %vm262_vm1, %v1424_v25 }
 0x142   : > { %v781_v61 = vpop.f32.mrf.mxu3  ;;  %v517_v22 = vadd.f32 %v516_v29, %v2378_v40  ;;  %v645_v31 = vpop.f32.mrf.mxu2  ;;  %v1411_v40 = vld [vmem:[#allocation3 + $0x7e] sm:$0xff] }
 0x143   : > { %v815_v33 = vadd.f32 %v781_v61, %v671_v19  ;;  %v1412_v19 = vld [vmem:[#allocation3 + $0x86] sm:$0xff] }
 0x144   : > { %1882 = vmatmul.msk.bf16.gmra.mxu1 %vm262_vm1, %v2458_v15  ;;  %v672_v37 = vadd.f32 %v640_v2, %v517_v22  ;;  %v1425_v15 = vpack.c.bf16 %v1411_v40, %v1410_v53  ;;  %v1267_v2 = vld [vmem:[#allocation3 + $0x7d] sm:$0xff]  ;;  %v1268_v22 = vld [vmem:[#allocation3 + $0x85] sm:$0xff] }
 0x145   : > { %v2496_v43 = vadd.f32 %v925_v8, %v815_v33  ;;  %v1281_v9 = vpack.c.bf16 %v1267_v2, %v1266_v1  ;;  %v236_v33 = vld [vmem:[#allocation2 + $0x60] sm:$0xf] }
 0x146   : > { %v930_v55 = vpop.f32.mrf.mxu0 }
 0x147   : > { %1904 = vmatmul.msk.bf16.gmra.mxu3 %vm262_vm1, %v1280_v35 }
 0x149   : > { %v518_v38 = vpop.f32.mrf.mxu1 }
 0x14a   : > { %v784_v47 = vpop.f32.mrf.mxu3  ;;  %v519_v51 = vadd.f32 %v518_v38, %v2388_v48  ;;  %v647_v6 = vpop.f32.mrf.mxu2 }
 0x14b   : > { %v816_v60 = vadd.f32 %v784_v47, %v672_v37  ;;  %v261_v37 = vunpack.c.l.bf16 %v236_v33 }
 0x14c   : > { %v673_v62 = vadd.f32 %v642_v30, %v519_v51 }
 0x14d   : > { %v2502_v0 = vadd.f32 %v928_v26, %v816_v60  ;;  %287 = vst.msk [vmem:[#allocation3 + $0xc0] sm:$0xff] %vm262_vm1, %v261_v37 }
 0x14e   : > { %v933_v42 = vpop.f32.mrf.mxu0 }
 0x14f   : > { %1895 = vmatmul.msk.bf16.gmra.mxu2 %vm262_vm1, %v2500_v59 }
 0x151   : > { %v521_v4 = vpop.f32.mrf.mxu1  ;;  %1916 = vmatmul.msk.bf16.gmra.mxu0 %vm262_vm1, %v1425_v15  ;;  %v1414_v15 = vld [vmem:[#allocation3 + $0x96] sm:$0xff] }
 0x152   : > { %v786_v48 = vpop.f32.mrf.mxu3  ;;  %v522_v36 = vadd.f32 %v521_v4, %v2368_v28  ;;  %v650_v5 = vpop.f32.mrf.mxu2  ;;  %v1413_v28 = vld [vmem:[#allocation3 + $0x8e] sm:$0xff] }
 0x153   : > { %v817_v8 = vadd.f32 %v786_v48, %v673_v62 }
 0x154   : > { %1883 = vmatmul.msk.bf16.gmra.mxu1 %vm262_vm1, %v2472_v52  ;;  %v674_v10 = vadd.f32 %v645_v31, %v522_v36  ;;  %v1426_v52 = vpack.c.bf16 %v1413_v28, %v1412_v19  ;;  %v1269_v31 = vld [vmem:[#allocation3 + $0x8d] sm:$0xff] }
 0x155   : > { %v2510_v24 = vadd.f32 %v930_v55, %v817_v8  ;;  %v1282_v47 = vpack.c.bf16 %v1269_v31, %v1268_v22  ;;  %v1270_v8 = vld [vmem:[#allocation3 + $0x95] sm:$0xff] }
 0x156   : > { %v935_v13 = vpop.f32.mrf.mxu0 }
 0x157   : > { %1905 = vmatmul.msk.bf16.gmra.mxu3 %vm262_vm1, %v1281_v9  ;;  %v1271_v9 = vld [vmem:[#allocation3 + $0x9d] sm:$0xff] }
 0x159   : > { %v523_v57 = vpop.f32.mrf.mxu1 }
 0x15a   : > { %v789_v30 = vpop.f32.mrf.mxu3  ;;  %v524_v17 = vadd.f32 %v523_v57, %v2376_v39  ;;  %v652_v25 = vpop.f32.mrf.mxu2  ;;  %v1971_v39 = vunpack.c.h.bf16 %v2390_v49  ;;  %v1128_v49 = vld [vmem:[#allocation3 + $0xa4] sm:$0xff]  ;;  %v1283_v57 = vpack.c.bf16 %v1271_v9, %v1270_v8 }
 0x15b   : > { %v818_v26 = vadd.f32 %v789_v30, %v674_v10 }
 0x15c   : > { %v675_v23 = vadd.f32 %v647_v6, %v524_v17  ;;  %286 = vst.msk [vmem:[#allocation3 + $0xb8] sm:$0xff] %vm262_vm1, %v1971_v39  ;;  %v1129_v6 = vld [vmem:[#allocation3 + $0xac] sm:$0xff] }
 0x15d   : > { %v2516_v29 = vadd.f32 %v933_v42, %v818_v26  ;;  %v1415_v42 = vld [vmem:[#allocation3 + $0x9e] sm:$0xff]  ;;  %v2531_v4 = vpack.c.bf16 %v1129_v6, %v1128_v49 }
 0x15e   : > { %v938_v61 = vpop.f32.mrf.mxu0  ;;  %v1427_v48 = vpack.c.bf16 %v1415_v42, %v1414_v15 }
 0x15f   : > { %1896 = vmatmul.msk.bf16.gmra.mxu2 %vm262_vm1, %v2514_v21 }
 0x161   : > { %v526_v35 = vpop.f32.mrf.mxu1  ;;  %1917 = vmatmul.msk.bf16.gmra.mxu0 %vm262_vm1, %v1426_v52 }
 0x162   : > { %v791_v55 = vpop.f32.mrf.mxu3  ;;  %v527_v44 = vadd.f32 %v526_v35, %v2386_v45  ;;  %v655_v46 = vpop.f32.mrf.mxu2 }
 0x163   : > { %v819_v38 = vadd.f32 %v791_v55, %v675_v23  ;;  %v1130_v28 = vld [vmem:[#allocation3 + $0xb4] sm:$0xff]  ;;  %v1272_v55 = vld [vmem:[#allocation3 + $0xa5] sm:$0xff] }
 0x164   : > { %1884 = vmatmul.msk.bf16.gmra.mxu1 %vm262_vm1, %v2486_v18  ;;  %v676_v51 = vadd.f32 %v650_v5, %v527_v44  ;;  %v1273_v44 = vld [vmem:[#allocation3 + $0xad] sm:$0xff]  ;;  %v1418_v15 = vld [vmem:[#allocation3 + $0xb6] sm:$0xff]  ;;  %v1419_v42 = vld [vmem:[#allocation3 + $0xbe] sm:$0xff] }
 0x165   : > { %v2527_v53 = vadd.f32 %v935_v13, %v819_v38  ;;  %v1274_v9 = vld [vmem:[#allocation3 + $0xb5] sm:$0xff] }
 0x166   : > { %v940_v40 = vpop.f32.mrf.mxu0 }
 0x167   : > { %1906 = vmatmul.msk.bf16.gmra.mxu3 %vm262_vm1, %v1282_v47 }
 0x169   : > { %v528_v60 = vpop.f32.mrf.mxu1 }
 0x16a   : > { %v794_v45 = vpop.f32.mrf.mxu3  ;;  %v529_v62 = vadd.f32 %v528_v60, %v2400_v58  ;;  %v657_v1 = vpop.f32.mrf.mxu2 }
 0x16b   : > { %v820_v2 = vadd.f32 %v794_v45, %v676_v51  ;;  %v1284_v51 = vpack.c.bf16 %v1273_v44, %v1272_v55 }
 0x16c   : > { %v677_v18 = vadd.f32 %v652_v25, %v529_v62  ;;  %v1131_v25 = vld [vmem:[#allocation3 + $0xbc] sm:$0xff] }
 0x16d   : > { %v2533_v36 = vadd.f32 %v938_v61, %v820_v2  ;;  %v1416_v61 = vld [vmem:[#allocation3 + $0xa6] sm:$0xff]  ;;  %v1141_v33 = vpack.c.bf16 %v1131_v25, %v1130_v28 }
 0x16e   : > { %v943_v5 = vpop.f32.mrf.mxu0 }
 0x16f   : > { %1897 = vmatmul.msk.bf16.gmra.mxu2 %vm262_vm1, %v2531_v4 }
 0x171   : > { %v531_v10 = vpop.f32.mrf.mxu1  ;;  %1918 = vmatmul.msk.bf16.gmra.mxu0 %vm262_vm1, %v1427_v48  ;;  %v1429_v48 = vpack.c.bf16 %v1419_v42, %v1418_v15 }
 0x172   : > { %v796_v58 = vpop.f32.mrf.mxu3  ;;  %v532_v13 = vadd.f32 %v531_v10, %v2408_v63  ;;  %v1186_v14 = vpop.f32.mrf.mxu2  ;;  %v1417_v63 = vld [vmem:[#allocation3 + $0xae] sm:$0xff]  ;;  %v1275_v10 = vld [vmem:[#allocation3 + $0xbd] sm:$0xff] }
 0x173   : > { %v821_v16 = vadd.f32 %v796_v58, %v677_v18  ;;  %v1428_v39 = vpack.c.bf16 %v1417_v63, %v1416_v61  ;;  %v2558_v18 = vld [vmem:[%s2646_s2] ss:$0 sm:$0xff]  ;;  %v1285_v28 = vpack.c.bf16 %v1275_v10, %v1274_v9 }
 0x174   : > { %1885 = vmatmul.msk.bf16.gmra.mxu1 %vm262_vm1, %v2500_v59  ;;  %v678_v30 = vadd.f32 %v655_v46, %v532_v13 }
 0x175   : > { %v2541_v17 = vadd.f32 %v940_v40, %v821_v16 }
 0x176   : > { %v945_v19 = vpop.f32.mrf.mxu0 }
 0x177   : > { %1907 = vmatmul.msk.bf16.gmra.mxu3 %vm262_vm1, %v1283_v57 }
 0x179   : > { %v533_v26 = vpop.f32.mrf.mxu1 }
 0x17a   : > { %v799_v23 = vpop.f32.mrf.mxu3  ;;  %v534_v52 = vadd.f32 %v533_v26, %v2412_v11  ;;  %v1188_v22 = vpop.f32.mrf.mxu2 }
 0x17b   : > { %v822_v31 = vadd.f32 %v799_v23, %v678_v30 }
 0x17c   : > { %v679_v35 = vadd.f32 %v657_v1, %v534_v52 }
 0x17d   : > { %v2545_v59 = vadd.f32 %v943_v5, %v822_v31 }
 0x17e   : > { %v1474_v37 = vpop.f32.mrf.mxu0 }
 0x17f   : > { %1898 = vmatmul.msk.bf16.gmra.mxu2 %vm262_vm1, %v1141_v33 }
 0x181   : > { %v1042_v46 = vpop.f32.mrf.mxu1  ;;  %1919 = vmatmul.msk.bf16.gmra.mxu0 %vm262_vm1, %v1428_v39 }
 0x182   : > { %v801_v38 = vpop.f32.mrf.mxu3  ;;  %v1191_v47 = vpop.f32.mrf.mxu2  ;;  %v1092_v40 = vadd.f32 %v1042_v46, %v2420_v34 }
 0x183   : > { %v823_v11 = vadd.f32 %v801_v38, %v679_v35 }
 0x184   : > { %1886 = vmatmul.msk.bf16.gmra.mxu1 %vm262_vm1, %v2514_v21  ;;  %v1236_v60 = vadd.f32 %v1186_v14, %v1092_v40 }
 0x185   : > { %v2552_v49 = vadd.f32 %v945_v19, %v823_v11 }
 0x186   : > { %v1476_v6 = vpop.f32.mrf.mxu0 }
 0x187   : > { %1908 = vmatmul.msk.bf16.gmra.mxu3 %vm262_vm1, %v1284_v51 }
 0x189   : > { %v1044_v45 = vpop.f32.mrf.mxu1 }
 0x18a   : > { %v1330_v62 = vpop.f32.mrf.mxu3  ;;  %v1193_v1 = vpop.f32.mrf.mxu2  ;;  %v1093_v34 = vadd.f32 %v1044_v45, %v2427_v54 }
 0x18b   : > { %v1380_v2 = vadd.f32 %v1330_v62, %v1236_v60 }
 0x18c   : > { %v1237_v13 = vadd.f32 %v1188_v22, %v1093_v34 }
 0x18d   : > { %v1524_v21 = vadd.f32 %v1474_v37, %v1380_v2 }
 0x18e   : > { %v1479_v5 = vpop.f32.mrf.mxu0 }
 0x18f   : > { %v1548_v8 = vadd.f32 %v2558_v18, %v1524_v21 }
 0x191   : > { %v1568_v58 = vsub.f32 0.0, %v1548_v8  ;;  %v1047_v14 = vpop.f32.mrf.mxu1  ;;  %1920 = vmatmul.msk.bf16.gmra.mxu0 %vm262_vm1, %v1429_v48 }
 0x192   : > { %v1332_v16 = vpop.f32.mrf.mxu3  ;;  %v1196_v57 = vpop.f32.mrf.mxu2  ;;  %v1094_v25 = vadd.f32 %v1047_v14, %v2433_v12 }
 0x193   : > { %v1588_v30 = vmul.f32 1.442695, %v1568_v58  ;;  %v1381_v19 = vadd.f32 %v1332_v16, %v1237_v13 }
 0x194   : > { %1887 = vmatmul.msk.bf16.gmra.mxu1 %vm262_vm1, %v2531_v4  ;;  %v1238_v61 = vadd.f32 %v1191_v47, %v1094_v25 }
 0x195   : > { %v1525_v54 = vadd.f32 %v1476_v6, %v1381_v19  ;;  %2087 = vpow2.f32 %v1588_v30 }
 0x196   : > { %v1481_v26 = vpop.f32.mrf.mxu0 }
 0x197   : > { %v1549_v23 = vadd.f32 %v2558_v18, %v1525_v54  ;;  %1909 = vmatmul.msk.bf16.gmra.mxu3 %vm262_vm1, %v1285_v28 }
 0x199   : > { %v1569_v52 = vsub.f32 0.0, %v1549_v23  ;;  %v1049_v63 = vpop.f32.mrf.mxu1 }
 0x19a   : > { %v1335_v22 = vpop.f32.mrf.mxu3  ;;  %v1198_v31 = vpop.f32.mrf.mxu2  ;;  %v1095_v4 = vadd.f32 %v1049_v63, %v2440_v27 }
 0x19b   : > { %v1590_v33 = vmul.f32 1.442695, %v1569_v52  ;;  %v1382_v35 = vadd.f32 %v1335_v22, %v1238_v61  ;;  %v2088_v39 = vpop.eup %2087 }
 0x19c   : > { %v1628_v12 = vadd.f32 1.0, %v2088_v39  ;;  %v1239_v38 = vadd.f32 %v1193_v1, %v1095_v4 }
 0x19d   : > { %2089 = vpow2.f32 %v1590_v33  ;;  %v1526_v37 = vadd.f32 %v1479_v5, %v1382_v35 }
 0x19e   : > { %v1484_v55 = vpop.f32.mrf.mxu0  ;;  %2091 = vrcp.f32 %v1628_v12 }
 0x19f   : > { %v1550_v44 = vadd.f32 %v2558_v18, %v1526_v37 }
 0x1a1   : > { %v1570_v46 = vsub.f32 0.0, %v1550_v44  ;;  %v1052_v11 = vpop.f32.mrf.mxu1 }
 0x1a2   : > { %v1337_v51 = vpop.f32.mrf.mxu3  ;;  %v1201_v40 = vpop.f32.mrf.mxu2  ;;  %v1096_v15 = vadd.f32 %v1052_v11, %v2446_v50 }
 0x1a3   : > { %v2090_v47 = vpop.eup %2089  ;;  %v1592_v6 = vmul.f32 1.442695, %v1570_v46  ;;  %v1383_v60 = vadd.f32 %v1337_v51, %v1239_v38 }
 0x1a4   : > { %v1629_v45 = vadd.f32 1.0, %v2090_v47  ;;  %v2092_v2 = vpop.eup %2091  ;;  %v1240_v34 = vadd.f32 %v1196_v57, %v1096_v15 }
 0x1a5   : > { %2093 = vpow2.f32 %v1592_v6  ;;  %v1527_v62 = vadd.f32 %v1481_v26, %v1383_v60  ;;  %v1668_v14 = vmul.f32 %v2092_v2, %v1548_v8 }
 0x1a6   : > { %2095 = vrcp.f32 %v1629_v45  ;;  %v1486_v27 = vpop.f32.mrf.mxu0 }
 0x1a7   : > { %v1551_v42 = vadd.f32 %v2558_v18, %v1527_v62 }
 0x1a9   : > { %v1571_v21 = vsub.f32 0.0, %v1551_v42  ;;  %v1054_v1 = vpop.f32.mrf.mxu1 }
 0x1aa   : > { %v1340_v48 = vpop.f32.mrf.mxu3  ;;  %v1203_v5 = vpop.f32.mrf.mxu2  ;;  %v1097_v50 = vadd.f32 %v1054_v1, %v2454_v3 }
 0x1ab   : > { %v2094_v9 = vpop.eup %2093  ;;  %v1594_v10 = vmul.f32 1.442695, %v1571_v21  ;;  %v1384_v58 = vadd.f32 %v1340_v48, %v1240_v34 }
 0x1ac   : > { %v2096_v13 = vpop.eup %2095  ;;  %v1630_v54 = vadd.f32 1.0, %v2094_v9  ;;  %v1241_v26 = vadd.f32 %v1198_v31, %v1097_v50 }
 0x1ad   : > { %v1669_v16 = vmul.f32 %v2096_v13, %v1549_v23  ;;  %2097 = vpow2.f32 %v1594_v10  ;;  %v1528_v30 = vadd.f32 %v1484_v55, %v1384_v58 }
 0x1ae   : > { %v1489_v19 = vpop.f32.mrf.mxu0  ;;  %2099 = vrcp.f32 %v1630_v54 }
 0x1af   : > { %v1975_v28 = vpack.c.bf16 %v1669_v16, %v1668_v14  ;;  %v2574_v25 = vadd.f32 %v2558_v18, %v1528_v30 }
 0x1b1   : > { %1976 = vst [vmem:[%s2262_s30] sm:$0xff] %v1975_v28   ;;  %v1572_v57 = vsub.f32 0.0, %v2574_v25  ;;  %v1057_v52 = vpop.f32.mrf.mxu1 }
 0x1b2   : > { %v1342_v61 = vpop.f32.mrf.mxu3  ;;  %v1206_v63 = vpop.f32.mrf.mxu2  ;;  %v1098_v35 = vadd.f32 %v1057_v52, %v2460_v41 }
 0x1b3   : > { %v2098_v22 = vpop.eup %2097  ;;  %v1596_v8 = vmul.f32 1.442695, %v1572_v57  ;;  %v1385_v23 = vadd.f32 %v1342_v61, %v1241_v26 }
 0x1b4   : > { %v1631_v33 = vadd.f32 1.0, %v2098_v22  ;;  %v2100_v4 = vpop.eup %2099  ;;  %v1242_v12 = vadd.f32 %v1201_v40, %v1098_v35 }
 0x1b5   : > { %2101 = vpow2.f32 %v1596_v8  ;;  %v1529_v3 = vadd.f32 %v1486_v27, %v1385_v23  ;;  %v1670_v6 = vmul.f32 %v2100_v4, %v1550_v44 }
 0x1b6   : > { %2103 = vrcp.f32 %v1631_v33  ;;  %v1491_v39 = vpop.f32.mrf.mxu0 }
 0x1b7   : > { %v1553_v37 = vadd.f32 %v2558_v18, %v1529_v3 }
 0x1b9   : > { %v1573_v55 = vsub.f32 0.0, %v1553_v37  ;;  %v1059_v31 = vpop.f32.mrf.mxu1 }
 0x1ba   : > { %v1345_v46 = vpop.f32.mrf.mxu3  ;;  %v1208_v60 = vpop.f32.mrf.mxu2  ;;  %v1099_v41 = vadd.f32 %v1059_v31, %v2468_v32 }
 0x1bb   : > { %v2102_v38 = vpop.eup %2101  ;;  %v1598_v11 = vmul.f32 1.442695, %v1573_v55  ;;  %v1386_v51 = vadd.f32 %v1345_v46, %v1242_v12 }
 0x1bc   : > { %v2104_v47 = vpop.eup %2103  ;;  %v1632_v2 = vadd.f32 1.0, %v2102_v38  ;;  %v1243_v34 = vadd.f32 %v1203_v5, %v1099_v41 }
 0x1bd   : > { %v1671_v45 = vmul.f32 %v2104_v47, %v1551_v42  ;;  %2105 = vpow2.f32 %v1598_v11  ;;  %v1530_v62 = vadd.f32 %v1489_v19, %v1386_v51 }
 0x1be   : > { %v1494_v15 = vpop.f32.mrf.mxu0  ;;  %2107 = vrcp.f32 %v1632_v2 }
 0x1bf   : > { %v1980_v27 = vpack.c.bf16 %v1671_v45, %v1670_v6  ;;  %v2582_v21 = vadd.f32 %v2558_v18, %v1530_v62 }
 0x1c1   : > { %2033 = vst [vmem:[%s2262_s30 + $0x8] sm:$0xff] %v1980_v27   ;;  %v1574_v40 = vsub.f32 0.0, %v2582_v21  ;;  %v1062_v1 = vpop.f32.mrf.mxu1 }
 0x1c2   : > { %v1347_v48 = vpop.f32.mrf.mxu3  ;;  %v1100_v32 = vadd.f32 %v1062_v1, %v2474_v56  ;;  %v1211_v14 = vpop.f32.mrf.mxu2 }
 0x1c3   : > { %v2106_v9 = vpop.eup %2105  ;;  %v1600_v44 = vmul.f32 1.442695, %v1574_v40  ;;  %v1387_v42 = vadd.f32 %v1347_v48, %v1243_v34 }
 0x1c4   : > { %v1633_v10 = vadd.f32 1.0, %v2106_v9  ;;  %v2108_v30 = vpop.eup %2107  ;;  %v1244_v19 = vadd.f32 %v1206_v63, %v1100_v32 }
 0x1c5   : > { %2109 = vpow2.f32 %v1600_v44  ;;  %v1531_v58 = vadd.f32 %v1491_v39, %v1387_v42  ;;  %v1672_v61 = vmul.f32 %v2108_v30, %v2574_v25 }
 0x1c6   : > { %2111 = vrcp.f32 %v1633_v10  ;;  %v1496_v13 = vpop.f32.mrf.mxu0 }
 0x1c7   : > { %v1555_v16 = vadd.f32 %v2558_v18, %v1531_v58 }
 0x1c9   : > { %v1575_v50 = vsub.f32 0.0, %v1555_v16  ;;  %v1064_v5 = vpop.f32.mrf.mxu1 }
 0x1ca   : > { %v1350_v28 = vpop.f32.mrf.mxu3  ;;  %v1101_v8 = vadd.f32 %v1064_v5, %v2482_v7  ;;  %v1213_v63 = vpop.f32.mrf.mxu2 }
 0x1cb   : > { %v2110_v54 = vpop.eup %2109  ;;  %v1602_v57 = vmul.f32 1.442695, %v1575_v50  ;;  %v1388_v26 = vadd.f32 %v1350_v28, %v1244_v19 }
 0x1cc   : > { %v2112_v52 = vpop.eup %2111  ;;  %v1634_v3 = vadd.f32 1.0, %v2110_v54  ;;  %v1245_v4 = vadd.f32 %v1208_v60, %v1101_v8 }
 0x1cd   : > { %v1673_v22 = vmul.f32 %v2112_v52, %v1553_v37  ;;  %2113 = vpow2.f32 %v1602_v57  ;;  %v1532_v56 = vadd.f32 %v1494_v15, %v1388_v26 }
 0x1ce   : > { %v1499_v23 = vpop.f32.mrf.mxu0  ;;  %2115 = vrcp.f32 %v1634_v3 }
 0x1cf   : > { %v1985_v33 = vpack.c.bf16 %v1673_v22, %v1672_v61  ;;  %v2591_v35 = vadd.f32 %v2558_v18, %v1532_v56 }
 0x1d1   : > { %2034 = vst [vmem:[%s2262_s30 + $0x10] sm:$0xff] %v1985_v33   ;;  %v1576_v39 = vsub.f32 0.0, %v2591_v35  ;;  %v1067_v55 = vpop.f32.mrf.mxu1 }
 0x1d2   : > { %v1352_v12 = vpop.f32.mrf.mxu3  ;;  %v1102_v38 = vadd.f32 %v1067_v55, %v2488_v20  ;;  %v1216_v41 = vpop.f32.mrf.mxu2 }
 0x1d3   : > { %v2114_v31 = vpop.eup %2113  ;;  %v1604_v25 = vmul.f32 1.442695, %v1576_v39  ;;  %v1389_v37 = vadd.f32 %v1352_v12, %v1245_v4 }
 0x1d4   : > { %v1635_v46 = vadd.f32 1.0, %v2114_v31  ;;  %v2116_v47 = vpop.eup %2115  ;;  %v1246_v45 = vadd.f32 %v1211_v14, %v1102_v38 }
 0x1d5   : > { %2117 = vpow2.f32 %v1604_v25  ;;  %v1533_v7 = vadd.f32 %v1496_v13, %v1389_v37  ;;  %v1674_v34 = vmul.f32 %v2116_v47, %v2582_v21 }
 0x1d6   : > { %2119 = vrcp.f32 %v1635_v46  ;;  %v1501_v11 = vpop.f32.mrf.mxu0 }
 0x1d7   : > { %v1557_v51 = vadd.f32 %v2558_v18, %v1533_v7 }
 0x1d9   : > { %v1577_v6 = vsub.f32 0.0, %v1557_v51  ;;  %v1069_v62 = vpop.f32.mrf.mxu1 }
 0x1da   : > { %v1355_v60 = vpop.f32.mrf.mxu3  ;;  %v1103_v48 = vadd.f32 %v1069_v62, %v2496_v43  ;;  %v1218_v19 = vpop.f32.mrf.mxu2 }
 0x1db   : > { %v2118_v15 = vpop.eup %2117  ;;  %v1606_v27 = vmul.f32 1.442695, %v1577_v6  ;;  %v1390_v2 = vadd.f32 %v1355_v60, %v1246_v45 }
 0x1dc   : > { %v2120_v40 = vpop.eup %2119  ;;  %v1636_v42 = vadd.f32 1.0, %v2118_v15  ;;  %v1247_v32 = vadd.f32 %v1213_v63, %v1103_v48 }
 0x1dd   : > { %v1675_v1 = vmul.f32 %v2120_v40, %v1555_v16  ;;  %2121 = vpow2.f32 %v1606_v27  ;;  %v1534_v20 = vadd.f32 %v1499_v23, %v1390_v2 }
 0x1de   : > { %v1504_v9 = vpop.f32.mrf.mxu0  ;;  %2123 = vrcp.f32 %v1636_v42 }
 0x1df   : > { %v1990_v44 = vpack.c.bf16 %v1675_v1, %v1674_v34  ;;  %v2600_v10 = vadd.f32 %v2558_v18, %v1534_v20 }
 0x1e1   : > { %2035 = vst [vmem:[%s2262_s30 + $0x18] sm:$0xff] %v1990_v44   ;;  %v1578_v58 = vsub.f32 0.0, %v2600_v10  ;;  %v1072_v13 = vpop.f32.mrf.mxu1 }
 0x1e2   : > { %v1357_v14 = vpop.f32.mrf.mxu3  ;;  %v1104_v5 = vadd.f32 %v1072_v13, %v2502_v0  ;;  %v1221_v4 = vpop.f32.mrf.mxu2 }
 0x1e3   : > { %v2122_v30 = vpop.eup %2121  ;;  %v1608_v21 = vmul.f32 1.442695, %v1578_v58  ;;  %v1391_v16 = vadd.f32 %v1357_v14, %v1247_v32 }
 0x1e4   : > { %v1637_v50 = vadd.f32 1.0, %v2122_v30  ;;  %v2124_v57 = vpop.eup %2123  ;;  %v1248_v52 = vadd.f32 %v1216_v41, %v1104_v5 }
 0x1e5   : > { %2125 = vpow2.f32 %v1608_v21  ;;  %v1535_v43 = vadd.f32 %v1501_v11, %v1391_v16  ;;  %v1676_v3 = vmul.f32 %v2124_v57, %v2591_v35 }
 0x1e6   : > { %2127 = vrcp.f32 %v1637_v50  ;;  %v1506_v54 = vpop.f32.mrf.mxu0 }
 0x1e7   : > { %v1559_v28 = vadd.f32 %v2558_v18, %v1535_v43 }
 0x1e9   : > { %v1579_v26 = vsub.f32 0.0, %v1559_v28  ;;  %v1074_v61 = vpop.f32.mrf.mxu1 }
 0x1ea   : > { %v1360_v22 = vpop.f32.mrf.mxu3  ;;  %v1105_v0 = vadd.f32 %v1074_v61, %v2510_v24  ;;  %v1223_v62 = vpop.f32.mrf.mxu2 }
 0x1eb   : > { %v2126_v56 = vpop.eup %2125  ;;  %v1610_v8 = vmul.f32 1.442695, %v1579_v26  ;;  %v1392_v23 = vadd.f32 %v1360_v22, %v1248_v52 }
 0x1ec   : > { %v2128_v33 = vpop.eup %2127  ;;  %v1638_v12 = vadd.f32 1.0, %v2126_v56  ;;  %v1249_v37 = vadd.f32 %v1218_v19, %v1105_v0 }
 0x1ed   : > { %v1677_v63 = vmul.f32 %v2128_v33, %v1557_v51  ;;  %2129 = vpow2.f32 %v1610_v8  ;;  %v1536_v39 = vadd.f32 %v1504_v9, %v1392_v23 }
 0x1ee   : > { %v1509_v7 = vpop.f32.mrf.mxu0  ;;  %2131 = vrcp.f32 %v1638_v12 }
 0x1ef   : > { %v1995_v55 = vpack.c.bf16 %v1677_v63, %v1676_v3  ;;  %v1560_v31 = vadd.f32 %v2558_v18, %v1536_v39 }
 0x1f1   : > { %2036 = vst [vmem:[%s2262_s30 + $0x20] sm:$0xff] %v1995_v55   ;;  %v1580_v25 = vsub.f32 0.0, %v1560_v31  ;;  %v1077_v46 = vpop.f32.mrf.mxu1 }
 0x1f2   : > { %v1362_v38 = vpop.f32.mrf.mxu3  ;;  %v1106_v24 = vadd.f32 %v1077_v46, %v2516_v29  ;;  %v1226_v16 = vpop.f32.mrf.mxu2 }
 0x1f3   : > { %v2130_v11 = vpop.eup %2129  ;;  %v1612_v47 = vmul.f32 1.442695, %v1580_v25  ;;  %v1393_v35 = vadd.f32 %v1362_v38, %v1249_v37 }
 0x1f4   : > { %v1639_v51 = vadd.f32 1.0, %v2130_v11  ;;  %v2132_v60 = vpop.eup %2131  ;;  %v1250_v15 = vadd.f32 %v1221_v4, %v1106_v24 }
 0x1f5   : > { %2133 = vpow2.f32 %v1612_v47  ;;  %v1537_v6 = vadd.f32 %v1506_v54, %v1393_v35  ;;  %v1678_v9 = vmul.f32 %v2132_v60, %v2600_v10 }
 0x1f6   : > { %2135 = vrcp.f32 %v1639_v51  ;;  %v1511_v20 = vpop.f32.mrf.mxu0 }
 0x1f7   : > { %v1561_v45 = vadd.f32 %v2558_v18, %v1537_v6 }
 0x1f9   : > { %v1581_v41 = vsub.f32 0.0, %v1561_v45  ;;  %v1079_v27 = vpop.f32.mrf.mxu1 }
 0x1fa   : > { %v1365_v2 = vpop.f32.mrf.mxu3  ;;  %v1107_v42 = vadd.f32 %v1079_v27, %v2527_v53  ;;  %v1228_v39 = vpop.f32.mrf.mxu2 }
 0x1fb   : > { %v2134_v40 = vpop.eup %2133  ;;  %v1614_v34 = vmul.f32 1.442695, %v1581_v41  ;;  %v1394_v1 = vadd.f32 %v1365_v2, %v1250_v15 }
 0x1fc   : > { %v2136_v48 = vpop.eup %2135  ;;  %v1640_v32 = vadd.f32 1.0, %v2134_v40  ;;  %v1251_v30 = vadd.f32 %v1223_v62, %v1107_v42 }
 0x1fd   : > { %v1679_v44 = vmul.f32 %v2136_v48, %v1559_v28  ;;  %2137 = vpow2.f32 %v1614_v34  ;;  %v1538_v29 = vadd.f32 %v1509_v7, %v1394_v1 }
 0x1fe   : > { %2139 = vrcp.f32 %v1640_v32  ;;  %v1514_v53 = vpop.f32.mrf.mxu0 }
 0x1ff   : > { %v2000_v58 = vpack.c.bf16 %v1679_v44, %v1678_v9  ;;  %v1562_v13 = vadd.f32 %v2558_v18, %v1538_v29 }
 0x201   : > { %2037 = vst [vmem:[%s2262_s30 + $0x28] sm:$0xff] %v2000_v58   ;;  %v1582_v14 = vsub.f32 0.0, %v1562_v13  ;;  %v1082_v21 = vpop.f32.mrf.mxu1 }
 0x202   : > { %v1367_v50 = vpop.f32.mrf.mxu3  ;;  %v1108_v54 = vadd.f32 %v1082_v21, %v2533_v36 }
 0x203   : > { %v2138_v19 = vpop.eup %2137  ;;  %v1616_v43 = vmul.f32 1.442695, %v1582_v14  ;;  %v1395_v5 = vadd.f32 %v1367_v50, %v1251_v30 }
 0x204   : > { %v1641_v10 = vadd.f32 1.0, %v2138_v19  ;;  %v2140_v26 = vpop.eup %2139  ;;  %v1252_v61 = vadd.f32 %v1226_v16, %v1108_v54 }
 0x205   : > { %2141 = vpow2.f32 %v1616_v43  ;;  %v1539_v28 = vadd.f32 %v1511_v20, %v1395_v5  ;;  %v1680_v63 = vmul.f32 %v2140_v26, %v1560_v31 }
 0x206   : > { %2143 = vrcp.f32 %v1641_v10  ;;  %v1516_v37 = vpop.f32.mrf.mxu0 }
 0x207   : > { %v1563_v57 = vadd.f32 %v2558_v18, %v1539_v28 }
 0x209   : > { %v1583_v52 = vsub.f32 0.0, %v1563_v57  ;;  %v1084_v22 = vpop.f32.mrf.mxu1 }
 0x20a   : > { %v1370_v56 = vpop.f32.mrf.mxu3  ;;  %v1109_v36 = vadd.f32 %v1084_v22, %v2541_v17  ;;  %v1231_v17 = vpop.f32.mrf.mxu2 }
 0x20b   : > { %v2142_v8 = vpop.eup %2141  ;;  %v1618_v23 = vmul.f32 1.442695, %v1583_v52  ;;  %v1396_v33 = vadd.f32 %v1370_v56, %v1252_v61 }
 0x20c   : > { %v2144_v3 = vpop.eup %2143  ;;  %v1642_v12 = vadd.f32 1.0, %v2142_v8  ;;  %v1253_v7 = vadd.f32 %v1228_v39, %v1109_v36 }
 0x20d   : > { %v1681_v0 = vmul.f32 %v2144_v3, %v1561_v45  ;;  %2145 = vpow2.f32 %v1618_v23  ;;  %v1540_v4 = vadd.f32 %v1514_v53, %v1396_v33 }
 0x20e   : > { %2147 = vrcp.f32 %v1642_v12  ;;  %v1519_v41 = vpop.f32.mrf.mxu0 }
 0x20f   : > { %v2005_v55 = vpack.c.bf16 %v1681_v0, %v1680_v63  ;;  %v1564_v25 = vadd.f32 %v2558_v18, %v1540_v4 }
 0x211   : > { %2038 = vst [vmem:[%s2262_s30 + $0x30] sm:$0xff] %v2005_v55   ;;  %v1584_v46 = vsub.f32 0.0, %v1564_v25  ;;  %v1087_v38 = vpop.f32.mrf.mxu1 }
 0x212   : > { %v1372_v11 = vpop.f32.mrf.mxu3  ;;  %v1110_v24 = vadd.f32 %v1087_v38, %v2545_v59  ;;  %v1233_v32 = vpop.f32.mrf.mxu2 }
 0x213   : > { %v2146_v47 = vpop.eup %2145  ;;  %v1620_v35 = vmul.f32 1.442695, %v1584_v46  ;;  %v1397_v31 = vadd.f32 %v1372_v11, %v1253_v7 }
 0x214   : > { %v1643_v51 = vadd.f32 1.0, %v2146_v47  ;;  %v2148_v62 = vpop.eup %2147  ;;  %v1254_v15 = vadd.f32 %v1231_v17, %v1110_v24 }
 0x215   : > { %v1541_v6 = vadd.f32 %v1516_v37, %v1397_v31  ;;  %v1682_v20 = vmul.f32 %v2148_v62, %v1562_v13 }
 0x216   : > { %2149 = vrcp.f32 %v1643_v51  ;;  %v1521_v43 = vpop.f32.mrf.mxu0 }
 0x217   : > { %2151 = vpow2.f32 %v1620_v35  ;;  %v1565_v45 = vadd.f32 %v2558_v18, %v1541_v6 }
 0x219   : > { %v1585_v60 = vsub.f32 0.0, %v1565_v45  ;;  %v1089_v2 = vpop.f32.mrf.mxu1 }
 0x21a   : > { %v1375_v27 = vpop.f32.mrf.mxu3  ;;  %v1111_v44 = vadd.f32 %v1089_v2, %v2552_v49 }
 0x21b   : > { %v1622_v40 = vmul.f32 1.442695, %v1585_v60  ;;  %v1398_v34 = vadd.f32 %v1375_v27, %v1254_v15 }
 0x21c   : > { %v2150_v1 = vpop.eup %2149  ;;  %v1255_v30 = vadd.f32 %v1233_v32, %v1111_v44 }
 0x21d   : > { %v2152_v48 = vpop.eup %2151  ;;  %v1683_v9 = vmul.f32 %v2150_v1, %v1563_v57  ;;  %2153 = vpow2.f32 %v1622_v40  ;;  %v1542_v59 = vadd.f32 %v1519_v41, %v1398_v34 }
 0x21e   : > { %v1644_v58 = vadd.f32 1.0, %v2152_v48 }
 0x21f   : > { %v2010_v29 = vpack.c.bf16 %v1683_v9, %v1682_v20  ;;  %v1566_v42 = vadd.f32 %v2558_v18, %v1542_v59 }
 0x220   : > { %2155 = vrcp.f32 %v1644_v58 }
 0x221   : > { %2039 = vst [vmem:[%s2262_s30 + $0x38] sm:$0xff] %v2010_v29   ;;  %v1586_v14 = vsub.f32 0.0, %v1566_v42 }
 0x222   : > { %v1377_v21 = vpop.f32.mrf.mxu3 }
 0x223   : > { %v2154_v16 = vpop.eup %2153  ;;  %v1624_v50 = vmul.f32 1.442695, %v1586_v14  ;;  %v1399_v19 = vadd.f32 %v1377_v21, %v1255_v30 }
 0x224   : > { %v1645_v13 = vadd.f32 1.0, %v2154_v16 }
 0x225   : > { %v1543_v5 = vadd.f32 %v1521_v43, %v1399_v19 }
 0x226   : > { %2157 = vrcp.f32 %v1645_v13  ;;  %v2156_v28 = vpop.eup %2155 }
 0x227   : > { %2159 = vpow2.f32 %v1624_v50  ;;  %v1567_v49 = vadd.f32 %v2558_v18, %v1543_v5  ;;  %v1684_v26 = vmul.f32 %v2156_v28, %v1564_v25 }
 0x229   : > { %v1587_v10 = vsub.f32 0.0, %v1567_v49 }
 0x22b   : > { %v1626_v54 = vmul.f32 1.442695, %v1587_v10 }
 0x22c   : > { %v2158_v53 = vpop.eup %2157 }
 0x22d   : > { %v2160_v57 = vpop.eup %2159  ;;  %v1685_v52 = vmul.f32 %v2158_v53, %v1565_v45  ;;  %2161 = vpow2.f32 %v1626_v54 }
 0x22e   : > { %v1646_v22 = vadd.f32 1.0, %v2160_v57 }
 0x22f   : > { %v2015_v61 = vpack.c.bf16 %v1685_v52, %v1684_v26 }
 0x230   : > { %2163 = vrcp.f32 %v1646_v22 }
 0x231   : > { %2040 = vst [vmem:[%s2262_s30 + $0x40] sm:$0xff] %v2015_v61  }
 0x233   : > { %v2162_v56 = vpop.eup %2161 }
 0x234   : > { %v1647_v8 = vadd.f32 1.0, %v2162_v56 }
 0x236   : > { %2165 = vrcp.f32 %v1647_v8  ;;  %v2164_v23 = vpop.eup %2163 }
 0x237   : > { %v1686_v3 = vmul.f32 %v2164_v23, %v1566_v42 }
 0x23c   : > { %v2166_v33 = vpop.eup %2165 }
 0x23d   : > { %v1687_v18 = vmul.f32 %v2166_v33, %v1567_v49 }
 0x23f   : > { %v2020_v63 = vpack.c.bf16 %v1687_v18, %v1686_v3 }
 0x241   : > { %2041 = vst [vmem:[%s2262_s30 + $0x48] sm:$0xff] %v2020_v63  }
 0x242 PF: > { %s13_s16 = sadd.s32 1, %s2207_s16   ;;  %s2648_s12 = smov %s2199_s14 }
 0x243   : > { %p10_p7 = scmp.ge.s32.totalorder %s13_s16, 6   ;;  %s2649_s13 = smov %s2203_s15 }
 0x244   : > { %s2650_s14 = smov %s2653_s17  ;;  %s2651_s15 = smov %s2657_s18 }
 0x245   :  { %12 = sbr.rel (!%p10_p7) target bundleno = 3 (0x3), region = 96 }
 0x24a   :  { %1758 = vsyncmov [#allocation4] }
 0x24d   :  { %s1759_s30 = vpop.sfrf %1758 }
 0x24e   :  { %p1923_p8 = scmp.ne.s32.totalorder %s1759_s30, 0 }
 0x250   :  { %1763 = shalt.err (%p1923_p8)  }

</bundles_post_ra>
